<compile_context>
chip_gen: v7x
topology: tpu7x:2x2x1
jax: 0.10.0
libtpu: 0.0.40
codegen_flags: <defaults>
</compile_context>

<pallas_src>
import jax
import jax.numpy as jnp
from jax.experimental import pallas as pl
from jax.experimental.pallas import tpu as pltpu  # noqa: F401  (kept for convention)

# ---- small, forward-consistent shapes -------------------------------------
B, C, IMG, P = 2, 3, 16, 8          # batch, in-channels, image size, patch
NH = IMG // P                        # patches per side
N = NH * NH                          # patches per image
T = N + 1                            # real tokens (CLS + patches)
TP = 8                               # tokens padded to a sublane tile
WIDTH = 32                           # transformer width
HEADS = 4
HDIM = WIDTH // HEADS
LAYERS = 2
FFN = 4 * WIDTH
CPP = C * P * P
EPS = 1e-5
LANES = 128

# ---- row layout of the f32 vector slab (every vector starts at lane 0) ----
ROW_CLSPOS = 0                       # B*TP rows: cls+pos[0] / pos[1+i] / zeros
ROW_LNPRE_G = B * TP                 # 16
ROW_LNPRE_B = ROW_LNPRE_G + 1
ROW_LNPOST_G = ROW_LNPRE_G + 2
ROW_LNPOST_B = ROW_LNPRE_G + 3
ROW_KMASK = ROW_LNPRE_G + 4          # additive key mask, lanes 0:TP
ROW_LAYER0 = ROW_LNPRE_G + 5         # 21
LAYER_ROWS = 8                       # ln1_g ln1_b ln2_g ln2_b bo bproj bqkv bfc
VEC_ROWS = ROW_LAYER0 + LAYERS * LAYER_ROWS


def _ln(x, g, b):
    """LayerNorm over last dim (biased variance, eps=1e-5, like torch)."""
    mu = jnp.mean(x, axis=-1, keepdims=True)
    xc = x - mu
    var = jnp.mean(xc * xc, axis=-1, keepdims=True)
    return xc * jax.lax.rsqrt(var + EPS) * g + b


# ---------------------------------------------------------------------------
# Kernel: single invocation, layers statically unrolled, activations carried
# as a value.  All matmuls feed the MXU in bf16 with f32 accumulation;
# LayerNorm / softmax / QuickGELU elementwise math stays f32 (v5e-friendly).
# ---------------------------------------------------------------------------
def encoder_kernel(patches_ref, wpatch_ref, vecs_ref, wbig_ref, wproj_ref, out_ref):
    f32, bf16 = jnp.float32, jnp.bfloat16
    W = WIDTH

    lnpre_g = vecs_ref[ROW_LNPRE_G:ROW_LNPRE_G + 1, 0:W]
    lnpre_b = vecs_ref[ROW_LNPRE_B:ROW_LNPRE_B + 1, 0:W]
    lnpost_g = vecs_ref[ROW_LNPOST_G:ROW_LNPOST_G + 1, 0:W]
    lnpost_b = vecs_ref[ROW_LNPOST_B:ROW_LNPOST_B + 1, 0:W]
    kmask = vecs_ref[ROW_KMASK:ROW_KMASK + 1, 0:TP]        # (1, TP) additive mask

    # ---- prologue: patch embed + (cls|pos) slab + ln_pre (layout in wrapper) ----
    x = jnp.dot(patches_ref[...], wpatch_ref[...], preferred_element_type=f32)
    x = x + vecs_ref[0:B * TP, 0:W]                        # cls+pos / pos / 0 rows
    x = _ln(x, lnpre_g, lnpre_b)                           # (B*TP, W) f32

    cls_rows = []
    for l in range(LAYERS):                                # static unroll
        base = ROW_LAYER0 + l * LAYER_ROWS
        ln1_g = vecs_ref[base + 0:base + 1, 0:W]
        ln1_b = vecs_ref[base + 1:base + 2, 0:W]
        ln2_g = vecs_ref[base + 2:base + 3, 0:W]
        ln2_b = vecs_ref[base + 3:base + 4, 0:W]
        bo = vecs_ref[base + 4:base + 5, 0:W]
        bproj = vecs_ref[base + 5:base + 6, 0:W]
        bqkv = vecs_ref[base + 6:base + 7, :]              # (1,128), lanes 96:128 = 0
        bfc = vecs_ref[base + 7:base + 8, :]               # (1,128)

        # ref-level weight slices out of the packed (L, W, 256) slab
        wqkvo = wbig_ref[l, :, 0:4 * W]                    # (W,128): [wq*s|wk|wv|wo]
        wo_l = wbig_ref[l, :, 3 * W:4 * W]                 # (W, W)
        wfc_l = wbig_ref[l, :, 4 * W:4 * W + FFN]          # (W, FFN)
        wpr_l = wproj_ref[l]                               # (FFN, W)

        # ---- pre-LN MHA, heads folded into the leading batch axis ----
        h1 = _ln(x, ln1_g, ln1_b).astype(bf16)
        # full-lane-tile matmul; lanes 96:128 of the result are never read
        qkv = jnp.dot(h1, wqkvo, preferred_element_type=f32) + bqkv   # (B*TP, 128)
        qkv = qkv.reshape(B, TP, 4 * W)
        q = jnp.concatenate(
            [qkv[:, :, hd * HDIM:(hd + 1) * HDIM] for hd in range(HEADS)], axis=0)
        k = jnp.concatenate(
            [qkv[:, :, W + hd * HDIM:W + (hd + 1) * HDIM] for hd in range(HEADS)], axis=0)
        v = jnp.concatenate(
            [qkv[:, :, 2 * W + hd * HDIM:2 * W + (hd + 1) * HDIM] for hd in range(HEADS)],
            axis=0)                                        # each (HEADS*B, TP, HDIM)

        s = jnp.einsum('btd,bsd->bts', q.astype(bf16), k.astype(bf16),
                       preferred_element_type=f32)         # (HEADS*B, TP, TP)
        s = s + kmask                                      # mask padded keys
        s = s - jnp.max(s, axis=-1, keepdims=True)
        p = jnp.exp(s)
        p = p * pl.reciprocal(jnp.sum(p, axis=-1, keepdims=True), approx=True)
        pv = jnp.einsum('bts,bsd->btd', p.astype(bf16), v.astype(bf16),
                        preferred_element_type=f32)        # (HEADS*B, TP, HDIM)

        o = jnp.concatenate([pv[hd * B:(hd + 1) * B] for hd in range(HEADS)],
                            axis=-1).reshape(B * TP, W)
        x = x + jnp.dot(o.astype(bf16), wo_l, preferred_element_type=f32) + bo

        # ---- MLP with QuickGELU ----
        h2 = _ln(x, ln2_g, ln2_b).astype(bf16)
        m = jnp.dot(h2, wfc_l, preferred_element_type=f32) + bfc      # (B*TP, FFN)
        m = m * pl.reciprocal(1.0 + jnp.exp(-1.702 * m), approx=True)
        x = x + jnp.dot(m.astype(bf16), wpr_l, preferred_element_type=f32) + bproj

        # stash raw CLS rows; ln_post applied once in the epilogue
        for b in range(B):
            cls_rows.append(x[b * TP:b * TP + 1, :])

    out_ref[...] = _ln(jnp.concatenate(cls_rows, axis=0), lnpost_g, lnpost_b)


# ---------------------------------------------------------------------------
# Wrapper: all layout glue (patch unfolding, token padding, scale folding,
# operand packing) lives here; the kernel only does compute.
# ---------------------------------------------------------------------------
def image_encoder_forward(x_nchw, params):
    f32, bf16 = jnp.float32, jnp.bfloat16

    # NCHW -> patch-major tokens; zero rows at CLS / pad positions
    xb = x_nchw.reshape(B, C, NH, P, NH, P)
    xb = xb.transpose(0, 2, 4, 1, 3, 5).reshape(B, N, CPP).astype(f32)
    patches = jnp.zeros((B, TP, CPP), f32).at[:, 1:T, :].set(xb)
    patches = patches.reshape(B * TP, CPP).astype(bf16)

    wpatch = params["conv1_w"].reshape(WIDTH, CPP).T.astype(bf16)    # (CPP, W)

    # cls+pos slab (same for every image, zeros on pad rows)
    clspos1 = jnp.zeros((TP, WIDTH), f32)
    clspos1 = clspos1.at[0].set(params["cls"] + params["pos"][0])
    clspos1 = clspos1.at[1:T].set(params["pos"][1:T])
    clspos = jnp.tile(clspos1, (B, 1))                               # (B*TP, W)

    # additive key mask: 0 on real tokens, -1e30 on pad tokens
    kmask = jnp.zeros((LANES,), f32).at[T:TP].set(-1e30)

    # fold 1/sqrt(HDIM) into the q columns of the in-projection
    scale = 1.0 / (HDIM ** 0.5)
    wqkv = jnp.swapaxes(params["in_proj_w"], 1, 2).at[:, :, 0:WIDTH].multiply(scale)
    bqkv = params["in_proj_b"].at[:, 0:WIDTH].multiply(scale)        # (L, 3W)
    wo = jnp.swapaxes(params["out_proj_w"], 1, 2)                    # (L, W, W)
    wfc = jnp.swapaxes(params["fc_w"], 1, 2)                         # (L, W, FFN)

    # f32 vector slab: one vector per row, lane-0 aligned, padded to 128 lanes
    def row(vec):
        vec = jnp.asarray(vec, f32).reshape(1, -1)
        return jnp.pad(vec, ((0, 0), (0, LANES - vec.shape[1])))

    rows = [jnp.pad(clspos, ((0, 0), (0, LANES - WIDTH))),
            row(params["lnpre_g"]), row(params["lnpre_b"]),
            row(params["lnpost_g"]), row(params["lnpost_b"]),
            kmask.reshape(1, LANES)]
    for l in range(LAYERS):
        rows += [row(params["ln1_g"][l]), row(params["ln1_b"][l]),
                 row(params["ln2_g"][l]), row(params["ln2_b"][l]),
                 row(params["out_proj_b"][l]), row(params["proj_b"][l]),
                 row(bqkv[l]), row(params["fc_b"][l])]
    vecs = jnp.concatenate(rows, axis=0)                             # (VEC_ROWS, 128)
    assert vecs.shape == (VEC_ROWS, LANES)

    # packed per-layer weights: [wq*scale | wk | wv | wo | wfc] -> (L, W, 256)
    wbig = jnp.concatenate([wqkv, wo, wfc], axis=-1).astype(bf16)
    wproj = jnp.swapaxes(params["proj_w"], 1, 2).astype(bf16)        # (L, FFN, W)

    # no grid: single invocation, whole-array VMEM refs, no pipelining overhead
    out = pl.pallas_call(
        encoder_kernel,
        out_shape=jax.ShapeDtypeStruct((LAYERS * B, WIDTH), jnp.float32),
    )(patches, wpatch, vecs, wbig, wproj)
    return out.reshape(LAYERS, B, WIDTH)


# ---------------------------------------------------------------------------
# Pure-JAX reference of the same forward (f32, sanity check only).
# ---------------------------------------------------------------------------
def reference_forward(x_nchw, params):
    xb = x_nchw.reshape(B, C, NH, P, NH, P)
    xb = xb.transpose(0, 2, 4, 1, 3, 5).reshape(B, N, CPP)
    emb = xb @ params["conv1_w"].reshape(WIDTH, CPP).T               # (B, N, W)
    cls = jnp.broadcast_to(params["cls"][None, None, :], (B, 1, WIDTH))
    x = jnp.concatenate([cls, emb], axis=1) + params["pos"][None]
    x = _ln(x, params["lnpre_g"], params["lnpre_b"])
    outs = []
    for l in range(LAYERS):
        h = _ln(x, params["ln1_g"][l], params["ln1_b"][l])
        qkv = h @ params["in_proj_w"][l].T + params["in_proj_b"][l]
        q, k, v = jnp.split(qkv, 3, axis=-1)
        q = q.reshape(B, T, HEADS, HDIM)
        k = k.reshape(B, T, HEADS, HDIM)
        v = v.reshape(B, T, HEADS, HDIM)
        s = jnp.einsum("bthd,bshd->bhts", q, k) / (HDIM ** 0.5)
        p = jax.nn.softmax(s, axis=-1)
        o = jnp.einsum("bhts,bshd->bthd", p, v).reshape(B, T, WIDTH)
        x = x + o @ params["out_proj_w"][l].T + params["out_proj_b"][l]
        h2 = _ln(x, params["ln2_g"][l], params["ln2_b"][l])
        m = h2 @ params["fc_w"][l].T + params["fc_b"][l]
        m = m * jax.nn.sigmoid(1.702 * m)                            # QuickGELU
        x = x + m @ params["proj_w"][l].T + params["proj_b"][l]
        outs.append(_ln(x[:, 0, :], params["lnpost_g"], params["lnpost_b"]))
    return jnp.stack(outs)


def make_params(key):
    ks = jax.random.split(key, 12)
    nrm = lambda k, shape, s=0.02: jax.random.normal(k, shape, jnp.float32) * s
    return {
        "conv1_w": nrm(ks[0], (WIDTH, C, P, P)),                     # conv1 (bias=False)
        "cls": nrm(ks[1], (WIDTH,)),                                 # class_embedding
        "pos": nrm(ks[2], (T, WIDTH)),                               # positional_embedding
        "lnpre_g": jnp.ones((WIDTH,), jnp.float32),
        "lnpre_b": jnp.zeros((WIDTH,), jnp.float32),
        "ln1_g": jnp.ones((LAYERS, WIDTH), jnp.float32),
        "ln1_b": jnp.zeros((LAYERS, WIDTH), jnp.float32),
        "in_proj_w": nrm(ks[3], (LAYERS, 3 * WIDTH, WIDTH)),
        "in_proj_b": nrm(ks[4], (LAYERS, 3 * WIDTH)),
        "out_proj_w": nrm(ks[5], (LAYERS, WIDTH, WIDTH)),
        "out_proj_b": nrm(ks[6], (LAYERS, WIDTH)),
        "ln2_g": jnp.ones((LAYERS, WIDTH), jnp.float32),
        "ln2_b": jnp.zeros((LAYERS, WIDTH), jnp.float32),
        "fc_w": nrm(ks[7], (LAYERS, FFN, WIDTH)),
        "fc_b": nrm(ks[8], (LAYERS, FFN)),
        "proj_w": nrm(ks[9], (LAYERS, WIDTH, FFN)),
        "proj_b": nrm(ks[10], (LAYERS, WIDTH)),
        "lnpost_g": jnp.ones((WIDTH,), jnp.float32),
        "lnpost_b": jnp.zeros((WIDTH,), jnp.float32),
    }
    # NOTE: the torch module's Q/K/V Linear layers are only used by
    # self_attention(), not by forward(), so they are not needed here.


if __name__ == "__main__":
    key = jax.random.PRNGKey(0)
    pkey, xkey = jax.random.split(key)
    params = make_params(pkey)
    x = jax.random.normal(xkey, (B, C, IMG, IMG), jnp.float32)       # NCHW input

    out = image_encoder_forward(x, params)                           # (L, B, WIDTH)
    out = jax.block_until_ready(out)

    ref = reference_forward(x, params)
    err = float(jnp.max(jnp.abs(out - ref)))
    # bf16 MXU inputs + approx reciprocals: deliberate, loose tolerance.
    if not (err < 5e-2):
        raise AssertionError(f"kernel/reference mismatch, max abs err = {err}")
    print("KERNEL_OK")
</pallas_src>

<mosaic_0001>
module attributes {stable_mosaic.version = 11 : i64} {
  func.func @encoder_kernel(%arg0: memref<16x192xbf16, #tpu.memory_space<vmem>>, %arg1: memref<192x32xbf16, #tpu.memory_space<vmem>>, %arg2: memref<37x128xf32, #tpu.memory_space<vmem>>, %arg3: memref<2x32x256xbf16, #tpu.memory_space<vmem>>, %arg4: memref<2x128x32xbf16, #tpu.memory_space<vmem>>, %arg5: memref<4x32xf32, #tpu.memory_space<vmem>>) attributes {dimension_semantics = [], scalar_prefetch = 0 : i64, scratch_operands = 0 : i64, tpu.core_type = #tpu.core_type<tc>} {
    %c16 = arith.constant 16 : index
    %c0 = arith.constant 0 : index
    %0 = vector.load %arg2[%c16, %c0] : memref<37x128xf32, #tpu.memory_space<vmem>>, vector<1x32xf32>
    %c17 = arith.constant 17 : index
    %c0_0 = arith.constant 0 : index
    %1 = vector.load %arg2[%c17, %c0_0] : memref<37x128xf32, #tpu.memory_space<vmem>>, vector<1x32xf32>
    %c18 = arith.constant 18 : index
    %c0_1 = arith.constant 0 : index
    %2 = vector.load %arg2[%c18, %c0_1] : memref<37x128xf32, #tpu.memory_space<vmem>>, vector<1x32xf32>
    %c19 = arith.constant 19 : index
    %c0_2 = arith.constant 0 : index
    %3 = vector.load %arg2[%c19, %c0_2] : memref<37x128xf32, #tpu.memory_space<vmem>>, vector<1x32xf32>
    %c20 = arith.constant 20 : index
    %c0_3 = arith.constant 0 : index
    %4 = vector.load %arg2[%c20, %c0_3] : memref<37x128xf32, #tpu.memory_space<vmem>>, vector<1x8xf32>
    %c0_4 = arith.constant 0 : index
    %c0_5 = arith.constant 0 : index
    %5 = vector.load %arg0[%c0_4, %c0_5] : memref<16x192xbf16, #tpu.memory_space<vmem>>, vector<16x192xbf16>
    %c0_6 = arith.constant 0 : index
    %c0_7 = arith.constant 0 : index
    %6 = vector.load %arg1[%c0_6, %c0_7] : memref<192x32xbf16, #tpu.memory_space<vmem>>, vector<192x32xbf16>
    %cst = arith.constant dense<0.000000e+00> : vector<16x32xf32>
    %7 = tpu.matmul %5, %6, %cst {dimension_numbers = #tpu.dot_dimension_numbers<[1], [0], [0], [1], [0, 0, 1, 1], [], []>} : vector<16x192xbf16>, vector<192x32xbf16>, vector<16x32xf32> -> vector<16x32xf32>
    %c0_8 = arith.constant 0 : index
    %c0_9 = arith.constant 0 : index
    %8 = vector.load %arg2[%c0_8, %c0_9] : memref<37x128xf32, #tpu.memory_space<vmem>>, vector<16x32xf32>
    %9 = arith.addf %7, %8 : vector<16x32xf32>
    %cst_10 = arith.constant dense<0.000000e+00> : vector<16xf32>
    %10 = vector.multi_reduction <add>, %9, %cst_10 [1] : vector<16x32xf32> to vector<16xf32>
    %11 = vector.shape_cast %10 : vector<16xf32> to vector<16x1xf32>
    %cst_11 = arith.constant 3.200000e+01 : f32
    %12 = vector.broadcast %cst_11 : f32 to vector<16x1xf32>
    %13 = arith.divf %11, %12 : vector<16x1xf32>
    %14 = vector.broadcast %13 : vector<16x1xf32> to vector<16x32xf32>
    %15 = arith.subf %9, %14 : vector<16x32xf32>
    %16 = arith.mulf %15, %15 : vector<16x32xf32>
    %cst_12 = arith.constant dense<0.000000e+00> : vector<16xf32>
    %17 = vector.multi_reduction <add>, %16, %cst_12 [1] : vector<16x32xf32> to vector<16xf32>
    %18 = vector.shape_cast %17 : vector<16xf32> to vector<16x1xf32>
    %cst_13 = arith.constant 3.200000e+01 : f32
    %19 = vector.broadcast %cst_13 : f32 to vector<16x1xf32>
    %20 = arith.divf %18, %19 : vector<16x1xf32>
    %cst_14 = arith.constant 9.99999974E-6 : f32
    %21 = vector.broadcast %cst_14 : f32 to vector<16x1xf32>
    %22 = arith.addf %20, %21 : vector<16x1xf32>
    %23 = math.rsqrt %22 : vector<16x1xf32>
    %24 = vector.broadcast %23 : vector<16x1xf32> to vector<16x32xf32>
    %25 = arith.mulf %15, %24 : vector<16x32xf32>
    %26 = vector.broadcast %0 : vector<1x32xf32> to vector<16x32xf32>
    %27 = arith.mulf %25, %26 : vector<16x32xf32>
    %28 = vector.broadcast %1 : vector<1x32xf32> to vector<16x32xf32>
    %29 = arith.addf %27, %28 : vector<16x32xf32>
    %c21 = arith.constant 21 : index
    %c0_15 = arith.constant 0 : index
    %30 = vector.load %arg2[%c21, %c0_15] : memref<37x128xf32, #tpu.memory_space<vmem>>, vector<1x32xf32>
    %c22 = arith.constant 22 : index
    %c0_16 = arith.constant 0 : index
    %31 = vector.load %arg2[%c22, %c0_16] : memref<37x128xf32, #tpu.memory_space<vmem>>, vector<1x32xf32>
    %c23 = arith.constant 23 : index
    %c0_17 = arith.constant 0 : index
    %32 = vector.load %arg2[%c23, %c0_17] : memref<37x128xf32, #tpu.memory_space<vmem>>, vector<1x32xf32>
    %c24 = arith.constant 24 : index
    %c0_18 = arith.constant 0 : index
    %33 = vector.load %arg2[%c24, %c0_18] : memref<37x128xf32, #tpu.memory_space<vmem>>, vector<1x32xf32>
    %c25 = arith.constant 25 : index
    %c0_19 = arith.constant 0 : index
    %34 = vector.load %arg2[%c25, %c0_19] : memref<37x128xf32, #tpu.memory_space<vmem>>, vector<1x32xf32>
    %c26 = arith.constant 26 : index
    %c0_20 = arith.constant 0 : index
    %35 = vector.load %arg2[%c26, %c0_20] : memref<37x128xf32, #tpu.memory_space<vmem>>, vector<1x32xf32>
    %c27 = arith.constant 27 : index
    %c0_21 = arith.constant 0 : index
    %36 = vector.load %arg2[%c27, %c0_21] : memref<37x128xf32, #tpu.memory_space<vmem>>, vector<1x128xf32>
    %c28 = arith.constant 28 : index
    %c0_22 = arith.constant 0 : index
    %37 = vector.load %arg2[%c28, %c0_22] : memref<37x128xf32, #tpu.memory_space<vmem>>, vector<1x128xf32>
    %c0_23 = arith.constant 0 : index
    %c0_24 = arith.constant 0 : index
    %c0_25 = arith.constant 0 : index
    %38 = vector.load %arg3[%c0_23, %c0_24, %c0_25] : memref<2x32x256xbf16, #tpu.memory_space<vmem>>, vector<1x32x128xbf16>
    %39 = vector.shape_cast %38 : vector<1x32x128xbf16> to vector<32x128xbf16>
    %c0_26 = arith.constant 0 : index
    %c0_27 = arith.constant 0 : index
    %c96 = arith.constant 96 : index
    %40 = vector.load %arg3[%c0_26, %c0_27, %c96] : memref<2x32x256xbf16, #tpu.memory_space<vmem>>, vector<1x32x32xbf16>
    %41 = vector.shape_cast %40 : vector<1x32x32xbf16> to vector<32x32xbf16>
    %c0_28 = arith.constant 0 : index
    %c0_29 = arith.constant 0 : index
    %c128 = arith.constant 128 : index
    %42 = vector.load %arg3[%c0_28, %c0_29, %c128] : memref<2x32x256xbf16, #tpu.memory_space<vmem>>, vector<1x32x128xbf16>
    %43 = vector.shape_cast %42 : vector<1x32x128xbf16> to vector<32x128xbf16>
    %c0_30 = arith.constant 0 : index
    %c0_31 = arith.constant 0 : index
    %c0_32 = arith.constant 0 : index
    %44 = vector.load %arg4[%c0_30, %c0_31, %c0_32] : memref<2x128x32xbf16, #tpu.memory_space<vmem>>, vector<1x128x32xbf16>
    %45 = vector.shape_cast %44 : vector<1x128x32xbf16> to vector<128x32xbf16>
    %cst_33 = arith.constant dense<0.000000e+00> : vector<16xf32>
    %46 = vector.multi_reduction <add>, %29, %cst_33 [1] : vector<16x32xf32> to vector<16xf32>
    %47 = vector.shape_cast %46 : vector<16xf32> to vector<16x1xf32>
    %cst_34 = arith.constant 3.200000e+01 : f32
    %48 = vector.broadcast %cst_34 : f32 to vector<16x1xf32>
    %49 = arith.divf %47, %48 : vector<16x1xf32>
    %50 = vector.broadcast %49 : vector<16x1xf32> to vector<16x32xf32>
    %51 = arith.subf %29, %50 : vector<16x32xf32>
    %52 = arith.mulf %51, %51 : vector<16x32xf32>
    %cst_35 = arith.constant dense<0.000000e+00> : vector<16xf32>
    %53 = vector.multi_reduction <add>, %52, %cst_35 [1] : vector<16x32xf32> to vector<16xf32>
    %54 = vector.shape_cast %53 : vector<16xf32> to vector<16x1xf32>
    %cst_36 = arith.constant 3.200000e+01 : f32
    %55 = vector.broadcast %cst_36 : f32 to vector<16x1xf32>
    %56 = arith.divf %54, %55 : vector<16x1xf32>
    %cst_37 = arith.constant 9.99999974E-6 : f32
    %57 = vector.broadcast %cst_37 : f32 to vector<16x1xf32>
    %58 = arith.addf %56, %57 : vector<16x1xf32>
    %59 = math.rsqrt %58 : vector<16x1xf32>
    %60 = vector.broadcast %59 : vector<16x1xf32> to vector<16x32xf32>
    %61 = arith.mulf %51, %60 : vector<16x32xf32>
    %62 = vector.broadcast %30 : vector<1x32xf32> to vector<16x32xf32>
    %63 = arith.mulf %61, %62 : vector<16x32xf32>
    %64 = vector.broadcast %31 : vector<1x32xf32> to vector<16x32xf32>
    %65 = arith.addf %63, %64 : vector<16x32xf32>
    %66 = arith.truncf %65 : vector<16x32xf32> to vector<16x32xbf16>
    %cst_38 = arith.constant dense<0.000000e+00> : vector<16x128xf32>
    %67 = tpu.matmul %66, %39, %cst_38 {dimension_numbers = #tpu.dot_dimension_numbers<[1], [0], [0], [1], [0, 0, 1, 1], [], []>} : vector<16x32xbf16>, vector<32x128xbf16>, vector<16x128xf32> -> vector<16x128xf32>
    %68 = vector.broadcast %36 : vector<1x128xf32> to vector<16x128xf32>
    %69 = arith.addf %67, %68 : vector<16x128xf32>
    %70 = vector.shape_cast %69 : vector<16x128xf32> to vector<2x8x128xf32>
    %71 = vector.extract_strided_slice %70 {offsets = [0, 0, 0], sizes = [2, 8, 8], strides = [1, 1, 1]} : vector<2x8x128xf32> to vector<2x8x8xf32>
    %72 = vector.extract_strided_slice %70 {offsets = [0, 0, 8], sizes = [2, 8, 8], strides = [1, 1, 1]} : vector<2x8x128xf32> to vector<2x8x8xf32>
    %73 = vector.extract_strided_slice %70 {offsets = [0, 0, 16], sizes = [2, 8, 8], strides = [1, 1, 1]} : vector<2x8x128xf32> to vector<2x8x8xf32>
    %74 = vector.extract_strided_slice %70 {offsets = [0, 0, 24], sizes = [2, 8, 8], strides = [1, 1, 1]} : vector<2x8x128xf32> to vector<2x8x8xf32>
    %75 = tpu.concatenate %71, %72, %73, %74 in 0 : vector<2x8x8xf32>, vector<2x8x8xf32>, vector<2x8x8xf32>, vector<2x8x8xf32> -> vector<8x8x8xf32>
    %76 = vector.extract_strided_slice %70 {offsets = [0, 0, 32], sizes = [2, 8, 8], strides = [1, 1, 1]} : vector<2x8x128xf32> to vector<2x8x8xf32>
    %77 = vector.extract_strided_slice %70 {offsets = [0, 0, 40], sizes = [2, 8, 8], strides = [1, 1, 1]} : vector<2x8x128xf32> to vector<2x8x8xf32>
    %78 = vector.extract_strided_slice %70 {offsets = [0, 0, 48], sizes = [2, 8, 8], strides = [1, 1, 1]} : vector<2x8x128xf32> to vector<2x8x8xf32>
    %79 = vector.extract_strided_slice %70 {offsets = [0, 0, 56], sizes = [2, 8, 8], strides = [1, 1, 1]} : vector<2x8x128xf32> to vector<2x8x8xf32>
    %80 = tpu.concatenate %76, %77, %78, %79 in 0 : vector<2x8x8xf32>, vector<2x8x8xf32>, vector<2x8x8xf32>, vector<2x8x8xf32> -> vector<8x8x8xf32>
    %81 = vector.extract_strided_slice %70 {offsets = [0, 0, 64], sizes = [2, 8, 8], strides = [1, 1, 1]} : vector<2x8x128xf32> to vector<2x8x8xf32>
    %82 = vector.extract_strided_slice %70 {offsets = [0, 0, 72], sizes = [2, 8, 8], strides = [1, 1, 1]} : vector<2x8x128xf32> to vector<2x8x8xf32>
    %83 = vector.extract_strided_slice %70 {offsets = [0, 0, 80], sizes = [2, 8, 8], strides = [1, 1, 1]} : vector<2x8x128xf32> to vector<2x8x8xf32>
    %84 = vector.extract_strided_slice %70 {offsets = [0, 0, 88], sizes = [2, 8, 8], strides = [1, 1, 1]} : vector<2x8x128xf32> to vector<2x8x8xf32>
    %85 = tpu.concatenate %81, %82, %83, %84 in 0 : vector<2x8x8xf32>, vector<2x8x8xf32>, vector<2x8x8xf32>, vector<2x8x8xf32> -> vector<8x8x8xf32>
    %86 = arith.truncf %75 : vector<8x8x8xf32> to vector<8x8x8xbf16>
    %87 = arith.truncf %80 : vector<8x8x8xf32> to vector<8x8x8xbf16>
    "tpu.trace_start"() <{level = 10 : i32, message = "btd,bsd->bts"}> : () -> ()
    %cst_39 = arith.constant dense<0.000000e+00> : vector<8x8x8xf32>
    %88 = tpu.matmul %86, %87, %cst_39 {dimension_numbers = #tpu.dot_dimension_numbers<[2], [2], [1], [1], [0, 0, 0, 1, 1, 1], [0], [0]>} : vector<8x8x8xbf16>, vector<8x8x8xbf16>, vector<8x8x8xf32> -> vector<8x8x8xf32>
    "tpu.trace_stop"() : () -> ()
    %89 = vector.shape_cast %4 : vector<1x8xf32> to vector<1x1x8xf32>
    %90 = vector.broadcast %89 : vector<1x1x8xf32> to vector<8x8x8xf32>
    %91 = arith.addf %88, %90 : vector<8x8x8xf32>
    %cst_40 = arith.constant dense<0xFF800000> : vector<8x8xf32>
    %92 = vector.multi_reduction <maximumf>, %91, %cst_40 [2] : vector<8x8x8xf32> to vector<8x8xf32>
    %93 = vector.shape_cast %92 : vector<8x8xf32> to vector<8x8x1xf32>
    %94 = vector.broadcast %93 : vector<8x8x1xf32> to vector<8x8x8xf32>
    %95 = arith.subf %91, %94 : vector<8x8x8xf32>
    %96 = math.exp %95 : vector<8x8x8xf32>
    %cst_41 = arith.constant dense<0.000000e+00> : vector<8x8xf32>
    %97 = vector.multi_reduction <add>, %96, %cst_41 [2] : vector<8x8x8xf32> to vector<8x8xf32>
    %98 = vector.shape_cast %97 : vector<8x8xf32> to vector<8x8x1xf32>
    %99 = tpu.reciprocal %98 {approx = true} : vector<8x8x1xf32> -> vector<8x8x1xf32>
    %100 = vector.broadcast %99 : vector<8x8x1xf32> to vector<8x8x8xf32>
    %101 = arith.mulf %96, %100 : vector<8x8x8xf32>
    %102 = arith.truncf %101 : vector<8x8x8xf32> to vector<8x8x8xbf16>
    %103 = arith.truncf %85 : vector<8x8x8xf32> to vector<8x8x8xbf16>
    "tpu.trace_start"() <{level = 10 : i32, message = "bts,bsd->btd"}> : () -> ()
    %cst_42 = arith.constant dense<0.000000e+00> : vector<8x8x8xf32>
    %104 = tpu.matmul %102, %103, %cst_42 {dimension_numbers = #tpu.dot_dimension_numbers<[2], [1], [1], [2], [0, 0, 0, 1, 1, 2], [0], [0]>} : vector<8x8x8xbf16>, vector<8x8x8xbf16>, vector<8x8x8xf32> -> vector<8x8x8xf32>
    "tpu.trace_stop"() : () -> ()
    %105 = vector.extract_strided_slice %104 {offsets = [0, 0, 0], sizes = [2, 8, 8], strides = [1, 1, 1]} : vector<8x8x8xf32> to vector<2x8x8xf32>
    %106 = vector.extract_strided_slice %104 {offsets = [2, 0, 0], sizes = [2, 8, 8], strides = [1, 1, 1]} : vector<8x8x8xf32> to vector<2x8x8xf32>
    %107 = vector.extract_strided_slice %104 {offsets = [4, 0, 0], sizes = [2, 8, 8], strides = [1, 1, 1]} : vector<8x8x8xf32> to vector<2x8x8xf32>
    %108 = vector.extract_strided_slice %104 {offsets = [6, 0, 0], sizes = [2, 8, 8], strides = [1, 1, 1]} : vector<8x8x8xf32> to vector<2x8x8xf32>
    %109 = tpu.concatenate %105, %106, %107, %108 in 2 : vector<2x8x8xf32>, vector<2x8x8xf32>, vector<2x8x8xf32>, vector<2x8x8xf32> -> vector<2x8x32xf32>
    %110 = vector.shape_cast %109 : vector<2x8x32xf32> to vector<16x32xf32>
    %111 = arith.truncf %110 : vector<16x32xf32> to vector<16x32xbf16>
    %cst_43 = arith.constant dense<0.000000e+00> : vector<16x32xf32>
    %112 = tpu.matmul %111, %41, %cst_43 {dimension_numbers = #tpu.dot_dimension_numbers<[1], [0], [0], [1], [0, 0, 1, 1], [], []>} : vector<16x32xbf16>, vector<32x32xbf16>, vector<16x32xf32> -> vector<16x32xf32>
    %113 = arith.addf %29, %112 : vector<16x32xf32>
    %114 = vector.broadcast %34 : vector<1x32xf32> to vector<16x32xf32>
    %115 = arith.addf %113, %114 : vector<16x32xf32>
    %cst_44 = arith.constant dense<0.000000e+00> : vector<16xf32>
    %116 = vector.multi_reduction <add>, %115, %cst_44 [1] : vector<16x32xf32> to vector<16xf32>
    %117 = vector.shape_cast %116 : vector<16xf32> to vector<16x1xf32>
    %cst_45 = arith.constant 3.200000e+01 : f32
    %118 = vector.broadcast %cst_45 : f32 to vector<16x1xf32>
    %119 = arith.divf %117, %118 : vector<16x1xf32>
    %120 = vector.broadcast %119 : vector<16x1xf32> to vector<16x32xf32>
    %121 = arith.subf %115, %120 : vector<16x32xf32>
    %122 = arith.mulf %121, %121 : vector<16x32xf32>
    %cst_46 = arith.constant dense<0.000000e+00> : vector<16xf32>
    %123 = vector.multi_reduction <add>, %122, %cst_46 [1] : vector<16x32xf32> to vector<16xf32>
    %124 = vector.shape_cast %123 : vector<16xf32> to vector<16x1xf32>
    %cst_47 = arith.constant 3.200000e+01 : f32
    %125 = vector.broadcast %cst_47 : f32 to vector<16x1xf32>
    %126 = arith.divf %124, %125 : vector<16x1xf32>
    %cst_48 = arith.constant 9.99999974E-6 : f32
    %127 = vector.broadcast %cst_48 : f32 to vector<16x1xf32>
    %128 = arith.addf %126, %127 : vector<16x1xf32>
    %129 = math.rsqrt %128 : vector<16x1xf32>
    %130 = vector.broadcast %129 : vector<16x1xf32> to vector<16x32xf32>
    %131 = arith.mulf %121, %130 : vector<16x32xf32>
    %132 = vector.broadcast %32 : vector<1x32xf32> to vector<16x32xf32>
    %133 = arith.mulf %131, %132 : vector<16x32xf32>
    %134 = vector.broadcast %33 : vector<1x32xf32> to vector<16x32xf32>
    %135 = arith.addf %133, %134 : vector<16x32xf32>
    %136 = arith.truncf %135 : vector<16x32xf32> to vector<16x32xbf16>
    %cst_49 = arith.constant dense<0.000000e+00> : vector<16x128xf32>
    %137 = tpu.matmul %136, %43, %cst_49 {dimension_numbers = #tpu.dot_dimension_numbers<[1], [0], [0], [1], [0, 0, 1, 1], [], []>} : vector<16x32xbf16>, vector<32x128xbf16>, vector<16x128xf32> -> vector<16x128xf32>
    %138 = vector.broadcast %37 : vector<1x128xf32> to vector<16x128xf32>
    %139 = arith.addf %137, %138 : vector<16x128xf32>
    %cst_50 = arith.constant -1.702000e+00 : f32
    %140 = vector.broadcast %cst_50 : f32 to vector<16x128xf32>
    %141 = arith.mulf %140, %139 : vector<16x128xf32>
    %142 = math.exp %141 : vector<16x128xf32>
    %cst_51 = arith.constant 1.000000e+00 : f32
    %143 = vector.broadcast %cst_51 : f32 to vector<16x128xf32>
    %144 = arith.addf %143, %142 : vector<16x128xf32>
    %145 = tpu.reciprocal %144 {approx = true} : vector<16x128xf32> -> vector<16x128xf32>
    %146 = arith.mulf %139, %145 : vector<16x128xf32>
    %147 = arith.truncf %146 : vector<16x128xf32> to vector<16x128xbf16>
    %cst_52 = arith.constant dense<0.000000e+00> : vector<16x32xf32>
    %148 = tpu.matmul %147, %45, %cst_52 {dimension_numbers = #tpu.dot_dimension_numbers<[1], [0], [0], [1], [0, 0, 1, 1], [], []>} : vector<16x128xbf16>, vector<128x32xbf16>, vector<16x32xf32> -> vector<16x32xf32>
    %149 = arith.addf %115, %148 : vector<16x32xf32>
    %150 = vector.broadcast %35 : vector<1x32xf32> to vector<16x32xf32>
    %151 = arith.addf %149, %150 : vector<16x32xf32>
    %152 = vector.extract_strided_slice %151 {offsets = [0, 0], sizes = [1, 32], strides = [1, 1]} : vector<16x32xf32> to vector<1x32xf32>
    %153 = vector.extract_strided_slice %151 {offsets = [8, 0], sizes = [1, 32], strides = [1, 1]} : vector<16x32xf32> to vector<1x32xf32>
    %c29 = arith.constant 29 : index
    %c0_53 = arith.constant 0 : index
    %154 = vector.load %arg2[%c29, %c0_53] : memref<37x128xf32, #tpu.memory_space<vmem>>, vector<1x32xf32>
    %c30 = arith.constant 30 : index
    %c0_54 = arith.constant 0 : index
    %155 = vector.load %arg2[%c30, %c0_54] : memref<37x128xf32, #tpu.memory_space<vmem>>, vector<1x32xf32>
    %c31 = arith.constant 31 : index
    %c0_55 = arith.constant 0 : index
    %156 = vector.load %arg2[%c31, %c0_55] : memref<37x128xf32, #tpu.memory_space<vmem>>, vector<1x32xf32>
    %c32 = arith.constant 32 : index
    %c0_56 = arith.constant 0 : index
    %157 = vector.load %arg2[%c32, %c0_56] : memref<37x128xf32, #tpu.memory_space<vmem>>, vector<1x32xf32>
    %c33 = arith.constant 33 : index
    %c0_57 = arith.constant 0 : index
    %158 = vector.load %arg2[%c33, %c0_57] : memref<37x128xf32, #tpu.memory_space<vmem>>, vector<1x32xf32>
    %c34 = arith.constant 34 : index
    %c0_58 = arith.constant 0 : index
    %159 = vector.load %arg2[%c34, %c0_58] : memref<37x128xf32, #tpu.memory_space<vmem>>, vector<1x32xf32>
    %c35 = arith.constant 35 : index
    %c0_59 = arith.constant 0 : index
    %160 = vector.load %arg2[%c35, %c0_59] : memref<37x128xf32, #tpu.memory_space<vmem>>, vector<1x128xf32>
    %c36 = arith.constant 36 : index
    %c0_60 = arith.constant 0 : index
    %161 = vector.load %arg2[%c36, %c0_60] : memref<37x128xf32, #tpu.memory_space<vmem>>, vector<1x128xf32>
    %c1 = arith.constant 1 : index
    %c0_61 = arith.constant 0 : index
    %c0_62 = arith.constant 0 : index
    %162 = vector.load %arg3[%c1, %c0_61, %c0_62] : memref<2x32x256xbf16, #tpu.memory_space<vmem>>, vector<1x32x128xbf16>
    %163 = vector.shape_cast %162 : vector<1x32x128xbf16> to vector<32x128xbf16>
    %c1_63 = arith.constant 1 : index
    %c0_64 = arith.constant 0 : index
    %c96_65 = arith.constant 96 : index
    %164 = vector.load %arg3[%c1_63, %c0_64, %c96_65] : memref<2x32x256xbf16, #tpu.memory_space<vmem>>, vector<1x32x32xbf16>
    %165 = vector.shape_cast %164 : vector<1x32x32xbf16> to vector<32x32xbf16>
    %c1_66 = arith.constant 1 : index
    %c0_67 = arith.constant 0 : index
    %c128_68 = arith.constant 128 : index
    %166 = vector.load %arg3[%c1_66, %c0_67, %c128_68] : memref<2x32x256xbf16, #tpu.memory_space<vmem>>, vector<1x32x128xbf16>
    %167 = vector.shape_cast %166 : vector<1x32x128xbf16> to vector<32x128xbf16>
    %c1_69 = arith.constant 1 : index
    %c0_70 = arith.constant 0 : index
    %c0_71 = arith.constant 0 : index
    %168 = vector.load %arg4[%c1_69, %c0_70, %c0_71] : memref<2x128x32xbf16, #tpu.memory_space<vmem>>, vector<1x128x32xbf16>
    %169 = vector.shape_cast %168 : vector<1x128x32xbf16> to vector<128x32xbf16>
    %cst_72 = arith.constant dense<0.000000e+00> : vector<16xf32>
    %170 = vector.multi_reduction <add>, %151, %cst_72 [1] : vector<16x32xf32> to vector<16xf32>
    %171 = vector.shape_cast %170 : vector<16xf32> to vector<16x1xf32>
    %cst_73 = arith.constant 3.200000e+01 : f32
    %172 = vector.broadcast %cst_73 : f32 to vector<16x1xf32>
    %173 = arith.divf %171, %172 : vector<16x1xf32>
    %174 = vector.broadcast %173 : vector<16x1xf32> to vector<16x32xf32>
    %175 = arith.subf %151, %174 : vector<16x32xf32>
    %176 = arith.mulf %175, %175 : vector<16x32xf32>
    %cst_74 = arith.constant dense<0.000000e+00> : vector<16xf32>
    %177 = vector.multi_reduction <add>, %176, %cst_74 [1] : vector<16x32xf32> to vector<16xf32>
    %178 = vector.shape_cast %177 : vector<16xf32> to vector<16x1xf32>
    %cst_75 = arith.constant 3.200000e+01 : f32
    %179 = vector.broadcast %cst_75 : f32 to vector<16x1xf32>
    %180 = arith.divf %178, %179 : vector<16x1xf32>
    %cst_76 = arith.constant 9.99999974E-6 : f32
    %181 = vector.broadcast %cst_76 : f32 to vector<16x1xf32>
    %182 = arith.addf %180, %181 : vector<16x1xf32>
    %183 = math.rsqrt %182 : vector<16x1xf32>
    %184 = vector.broadcast %183 : vector<16x1xf32> to vector<16x32xf32>
    %185 = arith.mulf %175, %184 : vector<16x32xf32>
    %186 = vector.broadcast %154 : vector<1x32xf32> to vector<16x32xf32>
    %187 = arith.mulf %185, %186 : vector<16x32xf32>
    %188 = vector.broadcast %155 : vector<1x32xf32> to vector<16x32xf32>
    %189 = arith.addf %187, %188 : vector<16x32xf32>
    %190 = arith.truncf %189 : vector<16x32xf32> to vector<16x32xbf16>
    %cst_77 = arith.constant dense<0.000000e+00> : vector<16x128xf32>
    %191 = tpu.matmul %190, %163, %cst_77 {dimension_numbers = #tpu.dot_dimension_numbers<[1], [0], [0], [1], [0, 0, 1, 1], [], []>} : vector<16x32xbf16>, vector<32x128xbf16>, vector<16x128xf32> -> vector<16x128xf32>
    %192 = vector.broadcast %160 : vector<1x128xf32> to vector<16x128xf32>
    %193 = arith.addf %191, %192 : vector<16x128xf32>
    %194 = vector.shape_cast %193 : vector<16x128xf32> to vector<2x8x128xf32>
    %195 = vector.extract_strided_slice %194 {offsets = [0, 0, 0], sizes = [2, 8, 8], strides = [1, 1, 1]} : vector<2x8x128xf32> to vector<2x8x8xf32>
    %196 = vector.extract_strided_slice %194 {offsets = [0, 0, 8], sizes = [2, 8, 8], strides = [1, 1, 1]} : vector<2x8x128xf32> to vector<2x8x8xf32>
    %197 = vector.extract_strided_slice %194 {offsets = [0, 0, 16], sizes = [2, 8, 8], strides = [1, 1, 1]} : vector<2x8x128xf32> to vector<2x8x8xf32>
    %198 = vector.extract_strided_slice %194 {offsets = [0, 0, 24], sizes = [2, 8, 8], strides = [1, 1, 1]} : vector<2x8x128xf32> to vector<2x8x8xf32>
    %199 = tpu.concatenate %195, %196, %197, %198 in 0 : vector<2x8x8xf32>, vector<2x8x8xf32>, vector<2x8x8xf32>, vector<2x8x8xf32> -> vector<8x8x8xf32>
    %200 = vector.extract_strided_slice %194 {offsets = [0, 0, 32], sizes = [2, 8, 8], strides = [1, 1, 1]} : vector<2x8x128xf32> to vector<2x8x8xf32>
    %201 = vector.extract_strided_slice %194 {offsets = [0, 0, 40], sizes = [2, 8, 8], strides = [1, 1, 1]} : vector<2x8x128xf32> to vector<2x8x8xf32>
    %202 = vector.extract_strided_slice %194 {offsets = [0, 0, 48], sizes = [2, 8, 8], strides = [1, 1, 1]} : vector<2x8x128xf32> to vector<2x8x8xf32>
    %203 = vector.extract_strided_slice %194 {offsets = [0, 0, 56], sizes = [2, 8, 8], strides = [1, 1, 1]} : vector<2x8x128xf32> to vector<2x8x8xf32>
    %204 = tpu.concatenate %200, %201, %202, %203 in 0 : vector<2x8x8xf32>, vector<2x8x8xf32>, vector<2x8x8xf32>, vector<2x8x8xf32> -> vector<8x8x8xf32>
    %205 = vector.extract_strided_slice %194 {offsets = [0, 0, 64], sizes = [2, 8, 8], strides = [1, 1, 1]} : vector<2x8x128xf32> to vector<2x8x8xf32>
    %206 = vector.extract_strided_slice %194 {offsets = [0, 0, 72], sizes = [2, 8, 8], strides = [1, 1, 1]} : vector<2x8x128xf32> to vector<2x8x8xf32>
    %207 = vector.extract_strided_slice %194 {offsets = [0, 0, 80], sizes = [2, 8, 8], strides = [1, 1, 1]} : vector<2x8x128xf32> to vector<2x8x8xf32>
    %208 = vector.extract_strided_slice %194 {offsets = [0, 0, 88], sizes = [2, 8, 8], strides = [1, 1, 1]} : vector<2x8x128xf32> to vector<2x8x8xf32>
    %209 = tpu.concatenate %205, %206, %207, %208 in 0 : vector<2x8x8xf32>, vector<2x8x8xf32>, vector<2x8x8xf32>, vector<2x8x8xf32> -> vector<8x8x8xf32>
    %210 = arith.truncf %199 : vector<8x8x8xf32> to vector<8x8x8xbf16>
    %211 = arith.truncf %204 : vector<8x8x8xf32> to vector<8x8x8xbf16>
    "tpu.trace_start"() <{level = 10 : i32, message = "btd,bsd->bts"}> : () -> ()
    %cst_78 = arith.constant dense<0.000000e+00> : vector<8x8x8xf32>
    %212 = tpu.matmul %210, %211, %cst_78 {dimension_numbers = #tpu.dot_dimension_numbers<[2], [2], [1], [1], [0, 0, 0, 1, 1, 1], [0], [0]>} : vector<8x8x8xbf16>, vector<8x8x8xbf16>, vector<8x8x8xf32> -> vector<8x8x8xf32>
    "tpu.trace_stop"() : () -> ()
    %213 = vector.shape_cast %4 : vector<1x8xf32> to vector<1x1x8xf32>
    %214 = vector.broadcast %213 : vector<1x1x8xf32> to vector<8x8x8xf32>
    %215 = arith.addf %212, %214 : vector<8x8x8xf32>
    %cst_79 = arith.constant dense<0xFF800000> : vector<8x8xf32>
    %216 = vector.multi_reduction <maximumf>, %215, %cst_79 [2] : vector<8x8x8xf32> to vector<8x8xf32>
    %217 = vector.shape_cast %216 : vector<8x8xf32> to vector<8x8x1xf32>
    %218 = vector.broadcast %217 : vector<8x8x1xf32> to vector<8x8x8xf32>
    %219 = arith.subf %215, %218 : vector<8x8x8xf32>
    %220 = math.exp %219 : vector<8x8x8xf32>
    %cst_80 = arith.constant dense<0.000000e+00> : vector<8x8xf32>
    %221 = vector.multi_reduction <add>, %220, %cst_80 [2] : vector<8x8x8xf32> to vector<8x8xf32>
    %222 = vector.shape_cast %221 : vector<8x8xf32> to vector<8x8x1xf32>
    %223 = tpu.reciprocal %222 {approx = true} : vector<8x8x1xf32> -> vector<8x8x1xf32>
    %224 = vector.broadcast %223 : vector<8x8x1xf32> to vector<8x8x8xf32>
    %225 = arith.mulf %220, %224 : vector<8x8x8xf32>
    %226 = arith.truncf %225 : vector<8x8x8xf32> to vector<8x8x8xbf16>
    %227 = arith.truncf %209 : vector<8x8x8xf32> to vector<8x8x8xbf16>
    "tpu.trace_start"() <{level = 10 : i32, message = "bts,bsd->btd"}> : () -> ()
    %cst_81 = arith.constant dense<0.000000e+00> : vector<8x8x8xf32>
    %228 = tpu.matmul %226, %227, %cst_81 {dimension_numbers = #tpu.dot_dimension_numbers<[2], [1], [1], [2], [0, 0, 0, 1, 1, 2], [0], [0]>} : vector<8x8x8xbf16>, vector<8x8x8xbf16>, vector<8x8x8xf32> -> vector<8x8x8xf32>
    "tpu.trace_stop"() : () -> ()
    %229 = vector.extract_strided_slice %228 {offsets = [0, 0, 0], sizes = [2, 8, 8], strides = [1, 1, 1]} : vector<8x8x8xf32> to vector<2x8x8xf32>
    %230 = vector.extract_strided_slice %228 {offsets = [2, 0, 0], sizes = [2, 8, 8], strides = [1, 1, 1]} : vector<8x8x8xf32> to vector<2x8x8xf32>
    %231 = vector.extract_strided_slice %228 {offsets = [4, 0, 0], sizes = [2, 8, 8], strides = [1, 1, 1]} : vector<8x8x8xf32> to vector<2x8x8xf32>
    %232 = vector.extract_strided_slice %228 {offsets = [6, 0, 0], sizes = [2, 8, 8], strides = [1, 1, 1]} : vector<8x8x8xf32> to vector<2x8x8xf32>
    %233 = tpu.concatenate %229, %230, %231, %232 in 2 : vector<2x8x8xf32>, vector<2x8x8xf32>, vector<2x8x8xf32>, vector<2x8x8xf32> -> vector<2x8x32xf32>
    %234 = vector.shape_cast %233 : vector<2x8x32xf32> to vector<16x32xf32>
    %235 = arith.truncf %234 : vector<16x32xf32> to vector<16x32xbf16>
    %cst_82 = arith.constant dense<0.000000e+00> : vector<16x32xf32>
    %236 = tpu.matmul %235, %165, %cst_82 {dimension_numbers = #tpu.dot_dimension_numbers<[1], [0], [0], [1], [0, 0, 1, 1], [], []>} : vector<16x32xbf16>, vector<32x32xbf16>, vector<16x32xf32> -> vector<16x32xf32>
    %237 = arith.addf %151, %236 : vector<16x32xf32>
    %238 = vector.broadcast %158 : vector<1x32xf32> to vector<16x32xf32>
    %239 = arith.addf %237, %238 : vector<16x32xf32>
    %cst_83 = arith.constant dense<0.000000e+00> : vector<16xf32>
    %240 = vector.multi_reduction <add>, %239, %cst_83 [1] : vector<16x32xf32> to vector<16xf32>
    %241 = vector.shape_cast %240 : vector<16xf32> to vector<16x1xf32>
    %cst_84 = arith.constant 3.200000e+01 : f32
    %242 = vector.broadcast %cst_84 : f32 to vector<16x1xf32>
    %243 = arith.divf %241, %242 : vector<16x1xf32>
    %244 = vector.broadcast %243 : vector<16x1xf32> to vector<16x32xf32>
    %245 = arith.subf %239, %244 : vector<16x32xf32>
    %246 = arith.mulf %245, %245 : vector<16x32xf32>
    %cst_85 = arith.constant dense<0.000000e+00> : vector<16xf32>
    %247 = vector.multi_reduction <add>, %246, %cst_85 [1] : vector<16x32xf32> to vector<16xf32>
    %248 = vector.shape_cast %247 : vector<16xf32> to vector<16x1xf32>
    %cst_86 = arith.constant 3.200000e+01 : f32
    %249 = vector.broadcast %cst_86 : f32 to vector<16x1xf32>
    %250 = arith.divf %248, %249 : vector<16x1xf32>
    %cst_87 = arith.constant 9.99999974E-6 : f32
    %251 = vector.broadcast %cst_87 : f32 to vector<16x1xf32>
    %252 = arith.addf %250, %251 : vector<16x1xf32>
    %253 = math.rsqrt %252 : vector<16x1xf32>
    %254 = vector.broadcast %253 : vector<16x1xf32> to vector<16x32xf32>
    %255 = arith.mulf %245, %254 : vector<16x32xf32>
    %256 = vector.broadcast %156 : vector<1x32xf32> to vector<16x32xf32>
    %257 = arith.mulf %255, %256 : vector<16x32xf32>
    %258 = vector.broadcast %157 : vector<1x32xf32> to vector<16x32xf32>
    %259 = arith.addf %257, %258 : vector<16x32xf32>
    %260 = arith.truncf %259 : vector<16x32xf32> to vector<16x32xbf16>
    %cst_88 = arith.constant dense<0.000000e+00> : vector<16x128xf32>
    %261 = tpu.matmul %260, %167, %cst_88 {dimension_numbers = #tpu.dot_dimension_numbers<[1], [0], [0], [1], [0, 0, 1, 1], [], []>} : vector<16x32xbf16>, vector<32x128xbf16>, vector<16x128xf32> -> vector<16x128xf32>
    %262 = vector.broadcast %161 : vector<1x128xf32> to vector<16x128xf32>
    %263 = arith.addf %261, %262 : vector<16x128xf32>
    %cst_89 = arith.constant -1.702000e+00 : f32
    %264 = vector.broadcast %cst_89 : f32 to vector<16x128xf32>
    %265 = arith.mulf %264, %263 : vector<16x128xf32>
    %266 = math.exp %265 : vector<16x128xf32>
    %cst_90 = arith.constant 1.000000e+00 : f32
    %267 = vector.broadcast %cst_90 : f32 to vector<16x128xf32>
    %268 = arith.addf %267, %266 : vector<16x128xf32>
    %269 = tpu.reciprocal %268 {approx = true} : vector<16x128xf32> -> vector<16x128xf32>
    %270 = arith.mulf %263, %269 : vector<16x128xf32>
    %271 = arith.truncf %270 : vector<16x128xf32> to vector<16x128xbf16>
    %cst_91 = arith.constant dense<0.000000e+00> : vector<16x32xf32>
    %272 = tpu.matmul %271, %169, %cst_91 {dimension_numbers = #tpu.dot_dimension_numbers<[1], [0], [0], [1], [0, 0, 1, 1], [], []>} : vector<16x128xbf16>, vector<128x32xbf16>, vector<16x32xf32> -> vector<16x32xf32>
    %273 = arith.addf %239, %272 : vector<16x32xf32>
    %274 = vector.broadcast %159 : vector<1x32xf32> to vector<16x32xf32>
    %275 = arith.addf %273, %274 : vector<16x32xf32>
    %276 = vector.extract_strided_slice %275 {offsets = [0, 0], sizes = [1, 32], strides = [1, 1]} : vector<16x32xf32> to vector<1x32xf32>
    %277 = vector.extract_strided_slice %275 {offsets = [8, 0], sizes = [1, 32], strides = [1, 1]} : vector<16x32xf32> to vector<1x32xf32>
    %278 = tpu.concatenate %152, %153, %276, %277 in 0 : vector<1x32xf32>, vector<1x32xf32>, vector<1x32xf32>, vector<1x32xf32> -> vector<4x32xf32>
    %cst_92 = arith.constant dense<0.000000e+00> : vector<4xf32>
    %279 = vector.multi_reduction <add>, %278, %cst_92 [1] : vector<4x32xf32> to vector<4xf32>
    %280 = vector.shape_cast %279 : vector<4xf32> to vector<4x1xf32>
    %cst_93 = arith.constant 3.200000e+01 : f32
    %281 = vector.broadcast %cst_93 : f32 to vector<4x1xf32>
    %282 = arith.divf %280, %281 : vector<4x1xf32>
    %283 = vector.broadcast %282 : vector<4x1xf32> to vector<4x32xf32>
    %284 = arith.subf %278, %283 : vector<4x32xf32>
    %285 = arith.mulf %284, %284 : vector<4x32xf32>
    %cst_94 = arith.constant dense<0.000000e+00> : vector<4xf32>
    %286 = vector.multi_reduction <add>, %285, %cst_94 [1] : vector<4x32xf32> to vector<4xf32>
    %287 = vector.shape_cast %286 : vector<4xf32> to vector<4x1xf32>
    %cst_95 = arith.constant 3.200000e+01 : f32
    %288 = vector.broadcast %cst_95 : f32 to vector<4x1xf32>
    %289 = arith.divf %287, %288 : vector<4x1xf32>
    %cst_96 = arith.constant 9.99999974E-6 : f32
    %290 = vector.broadcast %cst_96 : f32 to vector<4x1xf32>
    %291 = arith.addf %289, %290 : vector<4x1xf32>
    %292 = math.rsqrt %291 : vector<4x1xf32>
    %293 = vector.broadcast %292 : vector<4x1xf32> to vector<4x32xf32>
    %294 = arith.mulf %284, %293 : vector<4x32xf32>
    %295 = vector.broadcast %2 : vector<1x32xf32> to vector<4x32xf32>
    %296 = arith.mulf %294, %295 : vector<4x32xf32>
    %297 = vector.broadcast %3 : vector<1x32xf32> to vector<4x32xf32>
    %298 = arith.addf %296, %297 : vector<4x32xf32>
    %c0_97 = arith.constant 0 : index
    %c0_98 = arith.constant 0 : index
    %299 = vector.load %arg5[%c0_97, %c0_98] : memref<4x32xf32, #tpu.memory_space<vmem>>, vector<4x32xf32>
    tpu.vector_store %arg5[%c0_97, %c0_98], %298 {strides = array<i32>} : memref<4x32xf32, #tpu.memory_space<vmem>>, vector<4x32xf32>,
    return
  }
}

</mosaic_0001>

<bundles_post_ra>
// kernel: tpu_custom_call.1
= control target key start
LH: loop header
LB: loop body
LE: loop exit
PB: predicated region body
PF: predicated region fallthrough
CT: control target
= control target key end

     0   :  { %v3669_v1 = vmov 0   ;;  %vm136_vm0 = vcmask 523264   ;;  %s4464_s0 = inlined_call_operand.vmem [shape: bf16[16,192], index: 0, kind: input, shape index: {}]   ;;  %s4465_s1 = inlined_call_operand.vmem [shape: bf16[192,32], index: 1, kind: input, shape index: {}]   ;;  %s4466_s2 = inlined_call_operand.vmem [shape: f32[37,128], index: 2, kind: input, shape index: {}]   ;;  %s4467_s3 = inlined_call_operand.vmem [shape: bf16[2,32,256], index: 3, kind: input, shape index: {}]   ;;  %s4468_s4 = inlined_call_operand.vmem [shape: bf16[2,128,32], index: 4, kind: input, shape index: {}]   ;;  %s4469_s5 = inlined_call_operand.hbm [shape: f32[4,32], index: 5, kind: output, shape index: {}]  }
   0x1   :  { %v3503_v0 = vld [vmem:[%s4465_s1] sm:$0xff]   ;;  %140 = vmatprep.subr.bf16.mxu0 %v3669_v1  ;;  %v3504_v2 = vld [vmem:[%s4465_s1 + $0x8] sm:$0xff]   ;;  %v3505_v3 = vld [vmem:[%s4465_s1 + $0x10] sm:$0xff]  }
   0x2   :  { %141 = vmatpush1.bf16.msra.mxu0 %v3503_v0  ;;  %v3506_v4 = vld [vmem:[%s4465_s1 + $0x18] sm:$0xff]   ;;  %v3507_v5 = vld [vmem:[%s4465_s1 + $0x20] sm:$0xff]   ;;  %v3508_v7 = vld [vmem:[%s4465_s1 + $0x28] sm:$0xff]  }
   0x3   :  { %142 = vmatprep.subr.bf16.mxu0 %v3669_v1  ;;  %v3517_v6 = vld [vmem:[%s4464_s0 + $0x4] ss:$8 sps:$4 sm:$0xff]   ;;  %v3509_v8 = vld [vmem:[%s4465_s1 + $0x30] sm:$0xff]   ;;  %v3510_v9 = vld [vmem:[%s4465_s1 + $0x38] sm:$0xff]  }
   0x4   :  { %2957 = vmatprep.mubr.msk.bf16.mxu0 %vm136_vm0, %v3517_v6 }
   0x6   :  { %143 = vmatpush1.bf16.msra.mxu0 %v3504_v2 }
   0x7   :  { %144 = vmatprep.subr.bf16.mxu0 %v3669_v1 }
   0xa   :  { %145 = vmatpush1.bf16.msra.mxu0 %v3505_v3 }
   0xb   :  { %146 = vmatprep.subr.bf16.mxu0 %v3669_v1 }
   0xe   :  { %147 = vmatpush1.bf16.msra.mxu0 %v3506_v4 }
   0xf   :  { %148 = vmatprep.subr.bf16.mxu0 %v3669_v1 }
  0x12   :  { %149 = vmatpush1.bf16.msra.mxu0 %v3507_v5 }
  0x13   :  { %150 = vmatprep.subr.bf16.mxu0 %v3669_v1 }
  0x16   :  { %151 = vmatpush1.bf16.msra.mxu0 %v3508_v7 }
  0x17   :  { %152 = vmatprep.subr.bf16.mxu0 %v3669_v1 }
  0x1a   :  { %153 = vmatpush1.bf16.msra.mxu0 %v3509_v8 }
  0x1b   :  { %154 = vmatprep.subr.bf16.mxu0 %v3669_v1 }
  0x1c   :  { %10 = vsyncpa [#allocation3], 0  ;;  %v3511_v10 = vld [vmem:[%s4465_s1 + $0x40] sm:$0xff]   ;;  %v3512_v11 = vld [vmem:[%s4465_s1 + $0x48] sm:$0xff]   ;;  %vm181_vm1 = vcmask 261120   ;;  %v3670_v0 = vmov 0.0  }
  0x1d   :  { %v3513_v12 = vld [vmem:[%s4465_s1 + $0x50] sm:$0xff]   ;;  %v3514_v13 = vld [vmem:[%s4465_s1 + $0x58] sm:$0xff]   ;;  %v3515_v14 = vld [vmem:[%s4464_s0] ss:$8 sps:$4 sm:$0xff]   ;;  %3165 = vmatprep.subr.bf16.mxu1 %v3670_v0  ;;  %vm3671_vm2 = vmmov 0   ;;  %s3672_s12 = smov 120  }
  0x1e   :  { %155 = vmatpush1.bf16.msra.mxu0 %v3510_v9  ;;  %v53_v15 = vld [vmem:[%s4466_s2] sm:$0xff]  ;;  %v54_v17 = vld [vmem:[%s4466_s2 + $0x8] sm:$0xff]  ;;  %v2958_v42 = vld [vmem:[%s4466_s2 + $0x10] ss:$0 sm:$0xff]  ;;  %3169 = vmatprep.mubr.msk.bf16.mxu1 %vm3671_vm2, %v3670_v0  ;;  %s3673_s13 = smov 104   ;;  %s3674_s14 = smov 112  }
  0x1f   :  { %156 = vmatprep.subr.bf16.mxu0 %v3669_v1  ;;  %v2959_v44 = vld [vmem:[%s4466_s2 + $0x11] ss:$0 sm:$0xff]  ;;  %v3785_v63 = vld [vmem:[%s4467_s3] ss:$8 sps:$4 sm:$0xff]   ;;  %s3675_s15 = smov 96   ;;  %vm387_vm3 = vcmask 64512  }
  0x20   :  { %3166 = vmatpush3.bf16.msra.mxu1 %v3785_v63  ;;  %s3676_s18 = smov 64   ;;  %vm878_vm4 = vcmask 1043456   ;;  %s3677_s19 = smov 32   ;;  %vm1284_vm5 = vcmask 130048   ;;  %vm1287_vm6 = vcmask 195584   ;;  %vm2898_vm7 = vcmask 1040384  }
  0x21   :  { %3167 = vmatprep.subr.bf16.mxu1 %v3670_v0  ;;  %s3678_s20 = smov 8   ;;  %s3679_s21 = smov 16   ;;  %vm2900_vm8 = vcmask 1041408   ;;  %vm2902_vm9 = vcmask 1042432   ;;  %vm2904_vm10 = vcmask 257024  }
  0x22   :  { %157 = vmatpush1.bf16.msra.mxu0 %v3511_v10  ;;  %v2960_v10 = vld [vmem:[%s4466_s2 + $0x15] ss:$0 sm:$0xff]  ;;  %s3680_s22 = smov 24  }
  0x23   :  { %158 = vmatprep.subr.bf16.mxu0 %v3669_v1 }
  0x26   :  { %159 = vmatpush1.bf16.msra.mxu0 %v3512_v11 }
  0x27   :  { %160 = vmatprep.subr.bf16.mxu0 %v3669_v1 }
  0x2a   :  { %161 = vmatpush1.bf16.msra.mxu0 %v3513_v12 }
  0x2b   :  { %162 = vmatprep.subr.bf16.mxu0 %v3669_v1  ;;  %v3793_v1 = vld [vmem:[%s4467_s3 + $0x10] ss:$8 sps:$4 sm:$0xff]  }
  0x2c   :  { %3168 = vmatpush3.bf16.msra.mxu1 %v3793_v1 }
  0x2d   :  { %3173 = vmatprep.subr.bf16.mxu1 %v3670_v0 }
  0x2e   :  { %163 = vmatpush1.bf16.msra.mxu0 %v3514_v13 }
  0x2f   :  { %3227 = vmatprep.subr.bf16.mxu0 %v3670_v0 }
  0x31   :  { %173 = vmatmul.mubr.bf16.vlgmr.msra.gmra.mrb[0].mxu0 %v3515_v14  ;;  %v2961_v14 = vld [vmem:[%s4466_s2 + $0x16] ss:$0 sm:$0xff] }
  0x32   :  { %3229 = vmatprep.mubr.msk.bf16.mxu0 %vm3671_vm2, %v3670_v0 }
 0x104   :  { %v174_v16 = vpop.f32.mrb[0].mxu0 }
 0x105   :  { %v175_v18 = vadd.f32 %v174_v16, %v53_v15  ;;  %v176_v19 = vpop.f32.mrb[1].mxu0 }
 0x106   :  { %v177_v20 = vpop.f32.mrb[2].mxu0  ;;  %v2962_v19 = vld [vmem:[%s4466_s2 + $0x1b] ss:$0 sm:$0xff] }
 0x107   :  { %v178_v21 = vadd.f32 %v177_v20, %v54_v17  ;;  %v179_v22 = vpop.f32.mrb[3].mxu0  ;;  %v182_v23 = vsel %vm181_vm1, %v175_v18, 0.0 }
 0x108   :  { %183 = vadd.xlane.f32.xlu0 %v182_v23 }
 0x109   :  { %v185_v24 = vsel %vm181_vm1, %v178_v21, 0.0 }
 0x10c   :  { %186 = vadd.xlane.f32.xlu0 %v185_v24 }
 0x195   :  { %v184_v25 = vpop.xlane.xlu0 %183 }
 0x196   :  { %v189_v26 = vmul.f32 0.03125, %v184_v25 }
 0x198   :  { %v191_v27 = vsub.f32 %v175_v18, %v189_v26 }
 0x199   :  { %v187_v28 = vpop.xlane.xlu0 %186 }
 0x19a   :  { %v190_v29 = vmul.f32 0.03125, %v187_v28  ;;  %v193_v30 = vmul.f32 %v191_v27, %v191_v27 }
 0x19c   :  { %v192_v31 = vsub.f32 %v178_v21, %v190_v29  ;;  %v195_v32 = vsel %vm181_vm1, %v193_v30, 0.0 }
 0x19d   :  { %196 = vadd.xlane.f32.xlu1 %v195_v32 }
 0x19e   :  { %v194_v33 = vmul.f32 %v192_v31, %v192_v31 }
 0x1a0   :  { %v198_v34 = vsel %vm181_vm1, %v194_v33, 0.0 }
 0x1a1   :  { %199 = vadd.xlane.f32.xlu1 %v198_v34 }
 0x22a   :  { %v197_v35 = vpop.xlane.xlu1 %196 }
 0x22b   :  { %v201_v36 = vmul.f32 0.03125, %v197_v35 }
 0x22d   :  { %v203_v37 = vadd.f32 1e-05, %v201_v36 }
 0x22e   :  { %v200_v38 = vpop.xlane.xlu1 %199 }
 0x22f   :  { %3542 = vrsqrt.f32 %v203_v37  ;;  %v202_v39 = vmul.f32 0.03125, %v200_v38 }
 0x231   :  { %v204_v40 = vadd.f32 1e-05, %v202_v39 }
 0x233   :  { %3544 = vrsqrt.f32 %v204_v40 }
 0x239   :  { %v3543_v41 = vpop.eup %3542 }
 0x23a   :  { %v207_v43 = vmul.f32 %v3543_v41, %v191_v27 }
 0x23c   :  { %v213_v45 = vmul.f32 %v2958_v42, %v207_v43 }
 0x23d   :  { %v3545_v46 = vpop.eup %3544 }
 0x23e   :  { %v3770_v47 = vadd.f32 %v2959_v44, %v213_v45  ;;  %v208_v48 = vmul.f32 %v3545_v46, %v192_v31 }
 0x240   :  { %v253_v49 = vsel %vm181_vm1, %v3770_v47, 0.0  ;;  %v214_v50 = vmul.f32 %v2958_v42, %v208_v48 }
 0x241   :  { %254 = vadd.xlane.f32.xlu0 %v253_v49 }
 0x242   :  { %v3774_v51 = vadd.f32 %v2959_v44, %v214_v50 }
 0x244   :  { %v256_v52 = vsel %vm181_vm1, %v3774_v51, 0.0 }
 0x245   :  { %257 = vadd.xlane.f32.xlu1 %v256_v52 }
 0x2ce   :  { %v255_v53 = vpop.xlane.xlu0 %254 }
 0x2cf   :  { %v259_v54 = vmul.f32 0.03125, %v255_v53 }
 0x2d1   :  { %v261_v55 = vsub.f32 %v3770_v47, %v259_v54 }
 0x2d2   :  { %v258_v56 = vpop.xlane.xlu1 %257 }
 0x2d3   :  { %v260_v57 = vmul.f32 0.03125, %v258_v56  ;;  %v263_v58 = vmul.f32 %v261_v55, %v261_v55 }
 0x2d5   :  { %v262_v59 = vsub.f32 %v3774_v51, %v260_v57  ;;  %v265_v60 = vsel %vm181_vm1, %v263_v58, 0.0  ;;  %v2966_v58 = vld [vmem:[%s4466_s2 + $0x14] ss:$0 sm:$0xff] }
 0x2d6   :  { %266 = vadd.xlane.f32.xlu0 %v265_v60 }
 0x2d7   :  { %v264_v61 = vmul.f32 %v262_v59, %v262_v59 }
 0x2d9   :  { %v268_v62 = vsel %vm181_vm1, %v264_v61, 0.0 }
 0x2da   :  { %269 = vadd.xlane.f32.xlu1 %v268_v62 }
 0x363   :  { %v267_v2 = vpop.xlane.xlu0 %266 }
 0x364   :  { %v271_v3 = vmul.f32 0.03125, %v267_v2 }
 0x366   :  { %v273_v4 = vadd.f32 1e-05, %v271_v3 }
 0x367   :  { %v270_v5 = vpop.xlane.xlu1 %269 }
 0x368   :  { %3546 = vrsqrt.f32 %v273_v4  ;;  %v272_v6 = vmul.f32 0.03125, %v270_v5 }
 0x36a   :  { %v274_v7 = vadd.f32 1e-05, %v272_v6 }
 0x36c   :  { %3548 = vrsqrt.f32 %v274_v7 }
 0x372   :  { %v3547_v8 = vpop.eup %3546 }
 0x373   :  { %v277_v9 = vmul.f32 %v3547_v8, %v261_v55 }
 0x375   :  { %v283_v13 = vmul.f32 %v2960_v10, %v277_v9 }
 0x376   :  { %v3549_v11 = vpop.eup %3548 }
 0x377   :  { %v278_v12 = vmul.f32 %v3549_v11, %v262_v59  ;;  %v289_v16 = vadd.f32 %v2961_v14, %v283_v13 }
 0x379   :  { %v284_v15 = vmul.f32 %v2960_v10, %v278_v12 }
 0x37b   :  { %v290_v17 = vadd.f32 %v2961_v14, %v284_v15 }
 0x37d   :  { %v291_v18 = vpack.c.bf16 %v290_v17, %v289_v16 }
 0x37f   :  { %3170 = vmatmul.mubr.msk.bf16.vlgmr.msra.gmra.mrb[0].mxu1 %vm181_vm1, %v291_v18 }
 0x380   :  { %3175 = vmatprep.mubr.msk.bf16.mxu1 %vm3671_vm2, %v3670_v0 }
 0x452   :  { %v345_v20 = vpop.f32.mrb[0].mxu1 }
 0x453   :  { %v346_v21 = vadd.f32 %v2962_v19, %v345_v20  ;;  %v3171_v22 = vpop.f32.mrb[1].mxu1 }
 0x454   :  { %v348_v23 = vpop.f32.mrb[2].mxu1 }
 0x455   :  { %v349_v24 = vadd.f32 %v2962_v19, %v348_v23  ;;  %354 = vrot.lane.b32.xlu0 %v346_v21, %s3672_s12  ;;  %v3172_v25 = vpop.f32.mrb[3].mxu1  ;;  %v3818_v26 = vpack.c.bf16 %v346_v21, %v346_v21 }
 0x457   :  { %356 = vrot.lane.b32.xlu1 %v349_v24, %s3672_s12  ;;  %v3824_v27 = vpack.c.bf16 %v349_v24, %v349_v24 }
 0x459   :  { %366 = vrot.lane.b32.xlu0 %v346_v21, %s3673_s13 }
 0x45b   :  { %360 = vrot.lane.b32.xlu1 %v346_v21, %s3674_s14 }
 0x45d   :  { %385 = vrot.lane.b32.xlu0 %v3818_v26, %s3675_s15 }
 0x45f   :  { %362 = vrot.lane.b32.xlu1 %v349_v24, %s3674_s14 }
 0x463   :  { %368 = vrot.lane.b32.xlu1 %v349_v24, %s3673_s13 }
 0x467   :  { %435 = vrot.lane.b32.xlu1 %v3824_v27, %s3675_s15 }
 0x4c7   :  { %v355_v28 = vpop.permute.xlu0 %354 }
 0x4c8   :  { %v3828_v29 = vpack.c.bf16 %v355_v28, %v355_v28 }
 0x4c9   :  { %v357_v30 = vpop.permute.xlu1 %356 }
 0x4ca   :  { %v3830_v31 = vpack.c.bf16 %v357_v30, %v357_v30  ;;  %484 = vrot.lane.b32.xlu0 %v3828_v29, %s3675_s15 }
 0x4cb   :  { %v367_v32 = vpop.permute.xlu0 %366 }
 0x4cc   :  { %533 = vrot.lane.b32.xlu1 %v3830_v31, %s3675_s15  ;;  %v3841_v38 = vpack.c.bf16 %v367_v32, %v367_v32 }
 0x4cd   :  { %v361_v33 = vpop.permute.xlu1 %360 }
 0x4ce   :  { %v3836_v34 = vpack.c.bf16 %v361_v33, %v361_v33 }
 0x4cf   :  { %v386_v35 = vpop.permute.xlu0 %385 }
 0x4d0   :  { %v392_v36 = vsel %vm387_vm3, %v386_v35, 0  ;;  %582 = vrot.lane.b32.xlu0 %v3836_v34, %s3675_s15 }
 0x4d1   :  { %3174 = vmatpush3.bf16.xpose.msra.mxu1 %v392_v36  ;;  %v363_v37 = vpop.permute.xlu1 %362 }
 0x4d2   :  { %v3843_v39 = vpack.c.bf16 %v363_v37, %v363_v37  ;;  %3179 = vmatprep.subr.bf16.mxu1 %v3670_v0 }
 0x4d4   :  { %680 = vrot.lane.b32.xlu0 %v3841_v38, %s3675_s15  ;;  %631 = vrot.lane.b32.xlu1 %v3843_v39, %s3675_s15 }
 0x4d5   :  { %v369_v40 = vpop.permute.xlu1 %368 }
 0x4d6   :  { %v3850_v41 = vpack.c.bf16 %v369_v40, %v369_v40 }
 0x4d8   :  { %3176 = vmatmul.mubr.msk.bf16.vlgmr.msra.gmra.mrb[4].mxu1 %vm387_vm3, %v3818_v26  ;;  %729 = vrot.lane.b32.xlu1 %v3850_v41, %s3675_s15 }
 0x4d9   :  { %v436_v42 = vpop.permute.xlu1 %435  ;;  %3181 = vmatprep.mubr.msk.bf16.mxu1 %vm3671_vm2, %v3670_v0 }
 0x4da   :  { %v441_v43 = vsel %vm387_vm3, %v436_v42, 0 }
 0x4db   :  { %3180 = vmatpush3.bf16.xpose.msra.mxu1 %v441_v43 }
 0x4dc   :  { %3185 = vmatprep.subr.bf16.mxu1 %v3670_v0 }
 0x4e2   :  { %3182 = vmatmul.mubr.msk.bf16.vlgmr.msra.gmra.mrb[8].mxu1 %vm387_vm3, %v3824_v27 }
 0x4e3   :  { %3187 = vmatprep.mubr.msk.bf16.mxu1 %vm3671_vm2, %v3670_v0 }
 0x53c   :  { %v485_v44 = vpop.permute.xlu0 %484 }
 0x53d   :  { %v490_v45 = vsel %vm387_vm3, %v485_v44, 0 }
 0x53e   :  { %3186 = vmatpush3.bf16.xpose.msra.mxu1 %v490_v45  ;;  %v534_v46 = vpop.permute.xlu1 %533 }
 0x53f   :  { %3191 = vmatprep.subr.bf16.mxu1 %v3670_v0  ;;  %v539_v48 = vsel %vm387_vm3, %v534_v46, 0 }
 0x542   :  { %v583_v49 = vpop.permute.xlu0 %582 }
 0x543   :  { %v588_v50 = vsel %vm387_vm3, %v583_v49, 0 }
 0x545   :  { %3188 = vmatmul.mubr.msk.bf16.vlgmr.msra.gmra.mrb[12].mxu1 %vm387_vm3, %v3828_v29 }
 0x546   :  { %3192 = vmatpush3.bf16.xpose.msra.mxu1 %v539_v48  ;;  %3193 = vmatprep.mubr.msk.bf16.mxu1 %vm3671_vm2, %v3670_v0  ;;  %v632_v52 = vpop.permute.xlu1 %631  ;;  %v681_v54 = vpop.permute.xlu0 %680 }
 0x547   :  { %3197 = vmatprep.subr.bf16.mxu1 %v3670_v0  ;;  %v637_v53 = vsel %vm387_vm3, %v632_v52, 0  ;;  %v686_v55 = vsel %vm387_vm3, %v681_v54, 0 }
 0x54a   :  { %v730_v56 = vpop.permute.xlu1 %729 }
 0x54b   :  { %v735_v57 = vsel %vm387_vm3, %v730_v56, 0 }
 0x54d   :  { %3194 = vmatmul.mubr.msk.bf16.vlgmr.msra.gmra.mrb[16].mxu1 %vm387_vm3, %v3830_v31 }
 0x54e   :  { %3198 = vmatpush3.bf16.xpose.msra.mxu1 %v588_v50  ;;  %3199 = vmatprep.mubr.msk.bf16.mxu1 %vm3671_vm2, %v3670_v0 }
 0x54f   :  { %3203 = vmatprep.subr.bf16.mxu1 %v3670_v0 }
 0x555   :  { %3200 = vmatmul.mubr.msk.bf16.vlgmr.msra.gmra.mrb[20].mxu1 %vm387_vm3, %v3836_v34 }
 0x556   :  { %3204 = vmatpush3.bf16.xpose.msra.mxu1 %v637_v53  ;;  %3205 = vmatprep.mubr.msk.bf16.mxu1 %vm3671_vm2, %v3670_v0 }
 0x557   :  { %3209 = vmatprep.subr.bf16.mxu1 %v3670_v0 }
 0x55d   :  { %3206 = vmatmul.mubr.msk.bf16.vlgmr.msra.gmra.mrb[24].mxu1 %vm387_vm3, %v3843_v39 }
 0x55e   :  { %3210 = vmatpush3.bf16.xpose.msra.mxu1 %v686_v55  ;;  %3211 = vmatprep.mubr.msk.bf16.mxu1 %vm3671_vm2, %v3670_v0 }
 0x55f   :  { %3215 = vmatprep.subr.bf16.mxu1 %v3670_v0 }
 0x565   :  { %3212 = vmatmul.mubr.msk.bf16.vlgmr.msra.gmra.mrb[28].mxu1 %vm387_vm3, %v3841_v38 }
 0x566   :  { %3216 = vmatpush3.bf16.xpose.msra.mxu1 %v735_v57  ;;  %3217 = vmatprep.mubr.msk.bf16.mxu1 %vm3671_vm2, %v3670_v0 }
 0x567   :  { %3221 = vmatprep.subr.bf16.mxu1 %v3670_v0 }
 0x56d   :  { %3218 = vmatmul.mubr.msk.bf16.vlgmr.msra.gmra.mrb[32].mxu1 %vm387_vm3, %v3850_v41 }
 0x56e   :  { %3223 = vmatprep.mubr.msk.bf16.mxu1 %vm3671_vm2, %v3670_v0 }
 0x5ab   :  { %v428_v59 = vpop.f32.mrb[4].mxu1 }
 0x5ac   :  { %v429_v60 = vadd.f32 %v2966_v58, %v428_v59  ;;  %v3177_v61 = vpop.f32.mrb[5].mxu1 }
 0x5ad   :  { %v431_v62 = vpop.f32.mrb[6].mxu1 }
 0x5ae   :  { %v3178_v2 = vpop.f32.mrb[7].mxu1  ;;  %v777_v3 = vsel %vm387_vm3, %v429_v60, -inf }
 0x5af   :  { %778 = vmax.xlane.f32.xlu0 %v777_v3 }
 0x5b5   :  { %v477_v4 = vpop.f32.mrb[8].mxu1 }
 0x5b6   :  { %v478_v5 = vadd.f32 %v2966_v58, %v477_v4  ;;  %v3183_v6 = vpop.f32.mrb[9].mxu1 }
 0x5b7   :  { %v480_v7 = vpop.f32.mrb[10].mxu1 }
 0x5b8   :  { %v3184_v8 = vpop.f32.mrb[11].mxu1  ;;  %v780_v9 = vsel %vm387_vm3, %v478_v5, -inf }
 0x5b9   :  { %781 = vmax.xlane.f32.xlu1 %v780_v9 }
 0x618   :  { %v526_v10 = vpop.f32.mrb[12].mxu1 }
 0x619   :  { %v527_v11 = vadd.f32 %v2966_v58, %v526_v10  ;;  %v3189_v12 = vpop.f32.mrb[13].mxu1 }
 0x61a   :  { %v529_v13 = vpop.f32.mrb[14].mxu1 }
 0x61b   :  { %v3190_v14 = vpop.f32.mrb[15].mxu1  ;;  %v783_v15 = vsel %vm387_vm3, %v527_v11, -inf }
 0x61c   :  { %784 = vmax.xlane.f32.xlu0 %v783_v15 }
 0x620   :  { %v575_v16 = vpop.f32.mrb[16].mxu1 }
 0x621   :  { %v3906_v17 = vadd.f32 %v2966_v58, %v575_v16  ;;  %v3195_v18 = vpop.f32.mrb[17].mxu1 }
 0x622   :  { %v578_v19 = vpop.f32.mrb[18].mxu1 }
 0x623   :  { %v3196_v20 = vpop.f32.mrb[19].mxu1  ;;  %v786_v21 = vsel %vm387_vm3, %v3906_v17, -inf }
 0x624   :  { %787 = vmax.xlane.f32.xlu0 %v786_v21 }
 0x628   :  { %v624_v22 = vpop.f32.mrb[20].mxu1 }
 0x629   :  { %v3910_v23 = vadd.f32 %v2966_v58, %v624_v22  ;;  %v3201_v24 = vpop.f32.mrb[21].mxu1 }
 0x62a   :  { %v627_v25 = vpop.f32.mrb[22].mxu1 }
 0x62b   :  { %v3202_v28 = vpop.f32.mrb[23].mxu1  ;;  %v789_v30 = vsel %vm387_vm3, %v3910_v23, -inf }
 0x62c   :  { %790 = vmax.xlane.f32.xlu0 %v789_v30 }
 0x630   :  { %v673_v32 = vpop.f32.mrb[24].mxu1 }
 0x631   :  { %v674_v33 = vadd.f32 %v2966_v58, %v673_v32  ;;  %v3207_v35 = vpop.f32.mrb[25].mxu1 }
 0x632   :  { %v676_v36 = vpop.f32.mrb[26].mxu1 }
 0x633   :  { %v3208_v37 = vpop.f32.mrb[27].mxu1  ;;  %v792_v40 = vsel %vm387_vm3, %v674_v33, -inf }
 0x634   :  { %793 = vmax.xlane.f32.xlu1 %v792_v40 }
 0x638   :  { %v722_v42 = vpop.f32.mrb[28].mxu1 }
 0x639   :  { %v3915_v43 = vadd.f32 %v2966_v58, %v722_v42  ;;  %v3213_v44 = vpop.f32.mrb[29].mxu1 }
 0x63a   :  { %v725_v45 = vpop.f32.mrb[30].mxu1 }
 0x63b   :  { %v3214_v46 = vpop.f32.mrb[31].mxu1  ;;  %v795_v48 = vsel %vm387_vm3, %v3915_v43, -inf }
 0x63c   :  { %796 = vmax.xlane.f32.xlu0 %v795_v48  ;;  %v779_v54 = vpop.xlane.xlu0 %778 }
 0x63d   :  { %v801_v55 = vsub.f32 %v429_v60, %v779_v54 }
 0x63f   :  { %v809_v56 = vmul.f32 1.442695, %v801_v55 }
 0x640   :  { %v771_v49 = vpop.f32.mrb[32].mxu1 }
 0x641   :  { %v3219_v50 = vpop.f32.mrb[33].mxu1  ;;  %3550 = vpow2.f32 %v809_v56  ;;  %v3925_v57 = vadd.f32 %v2966_v58, %v771_v49 }
 0x642   :  { %v774_v52 = vpop.f32.mrb[34].mxu1 }
 0x643   :  { %v3220_v53 = vpop.f32.mrb[35].mxu1  ;;  %v798_v59 = vsel %vm387_vm3, %v3925_v57, -inf }
 0x645   :  { %922 = vrot.lane.b32.xlu1 %v3824_v27, %s3676_s18 }
 0x649   :  { %970 = vrot.lane.b32.xlu1 %v3828_v29, %s3676_s18 }
 0x64b   :  { %v3929_v61 = vpop.eup %3550 }
 0x64c   :  { %v825_v27 = vsel %vm387_vm3, %v3929_v61, 0.0 }
 0x652   :  { %873 = vrot.lane.b32.xlu0 %v3818_v26, %s3676_s18  ;;  %v782_v26 = vpop.xlane.xlu1 %781 }
 0x653   :  { %v802_v29 = vsub.f32 %v478_v5, %v782_v26 }
 0x655   :  { %v811_v60 = vmul.f32 1.442695, %v802_v29 }
 0x657   :  { %3552 = vpow2.f32 %v811_v60 }
 0x661   :  { %v3935_v62 = vpop.eup %3552 }
 0x662   :  { %v828_v58 = vsel %vm387_vm3, %v3935_v62, 0.0 }
 0x66d   :  { %799 = vmax.xlane.f32.xlu1 %v798_v59 }
 0x671   :  { %826 = vadd.xlane.f32.xlu0 %v825_v27 }
 0x67e   :  { %1018 = vrot.lane.b32.xlu1 %v3830_v31, %s3676_s18 }
 0x6a2   :  { %829 = vadd.xlane.f32.xlu1 %v828_v58 }
 0x6a9   :  { %v785_v2 = vpop.xlane.xlu0 %784 }
 0x6aa   :  { %v803_v3 = vsub.f32 %v527_v11, %v785_v2 }
 0x6ac   :  { %v813_v4 = vmul.f32 1.442695, %v803_v3 }
 0x6ae   :  { %3554 = vpow2.f32 %v813_v4 }
 0x6b1   :  { %v788_v5 = vpop.xlane.xlu0 %787 }
 0x6b2   :  { %v804_v7 = vsub.f32 %v3906_v17, %v788_v5 }
 0x6b3   :  { %1114 = vrot.lane.b32.xlu1 %v3843_v39, %s3676_s18 }
 0x6b4   :  { %v815_v9 = vmul.f32 1.442695, %v804_v7 }
 0x6b6   :  { %3556 = vpow2.f32 %v815_v9 }
 0x6b8   :  { %v3941_v6 = vpop.eup %3554 }
 0x6b9   :  { %v831_v31 = vsel %vm387_vm3, %v3941_v6, 0.0  ;;  %v791_v10 = vpop.xlane.xlu0 %790 }
 0x6ba   :  { %832 = vadd.xlane.f32.xlu0 %v831_v31  ;;  %v805_v20 = vsub.f32 %v3910_v23, %v791_v10 }
 0x6bc   :  { %v817_v22 = vmul.f32 1.442695, %v805_v20 }
 0x6c0   :  { %v3952_v17 = vpop.eup %3556 }
 0x6c1   :  { %v794_v8 = vpop.xlane.xlu1 %793  ;;  %v834_v18 = vsel %vm387_vm3, %v3952_v17, 0.0 }
 0x6c2   :  { %v806_v12 = vsub.f32 %v674_v33, %v794_v8 }
 0x6c4   :  { %v819_v39 = vmul.f32 1.442695, %v806_v12 }
 0x6c5   :  { %v923_v11 = vpop.permute.xlu1 %922 }
 0x6c6   :  { %v928_v13 = vsel %vm878_vm4, %v923_v11, 0  ;;  %3558 = vpow2.f32 %v819_v39 }
 0x6c7   :  { %3228 = vmatpush3.bf16.msra.mxu0 %v928_v13  ;;  %3560 = vpow2.f32 %v817_v22 }
 0x6c8   :  { %3239 = vmatprep.subr.bf16.mxu0 %v3670_v0 }
 0x6c9   :  { %v797_v14 = vpop.xlane.xlu0 %796  ;;  %v971_v32 = vpop.permute.xlu1 %970 }
 0x6ca   :  { %v807_v24 = vsub.f32 %v3915_v43, %v797_v14  ;;  %v976_v46 = vsel %vm878_vm4, %v971_v32, 0 }
 0x6cd   :  { %v874_v15 = vpop.permute.xlu0 %873 }
 0x6ce   :  { %v880_v16 = vsel %vm878_vm4, %v874_v15, 0 }
 0x6cf   :  { %3222 = vmatpush3.bf16.msra.mxu1 %v880_v16 }
 0x6d0   :  { %1066 = vrot.lane.b32.xlu0 %v3836_v34, %s3676_s18  ;;  %3233 = vmatprep.subr.bf16.mxu1 %v3670_v0  ;;  %v3956_v19 = vpop.eup %3558  ;;  %v821_v34 = vmul.f32 1.442695, %v807_v24 }
 0x6d1   :  { %v840_v21 = vsel %vm387_vm3, %v3956_v19, 0.0  ;;  %v3962_v25 = vpop.eup %3560 }
 0x6d2   :  { %3562 = vpow2.f32 %v821_v34  ;;  %v837_v28 = vsel %vm387_vm3, %v3962_v25, 0.0 }
 0x6d7   :  { %835 = vadd.xlane.f32.xlu1 %v834_v18 }
 0x6db   :  { %841 = vadd.xlane.f32.xlu1 %v840_v21 }
 0x6dc   :  { %v3966_v30 = vpop.eup %3562 }
 0x6dd   :  { %v843_v23 = vsel %vm387_vm3, %v3966_v30, 0.0 }
 0x6ef   :  { %838 = vadd.xlane.f32.xlu0 %v837_v28 }
 0x6f3   :  { %844 = vadd.xlane.f32.xlu0 %v843_v23 }
 0x6fa   :  { %v800_v33 = vpop.xlane.xlu1 %799 }
 0x6fb   :  { %v808_v35 = vsub.f32 %v3925_v57, %v800_v33 }
 0x6fd   :  { %v823_v36 = vmul.f32 1.442695, %v808_v35 }
 0x6fe   :  { %v827_v37 = vpop.xlane.xlu0 %826 }
 0x6ff   :  { %3564 = vpow2.f32 %v823_v36 }
 0x700   :  { %3566 = vrcp.f32 %v827_v37 }
 0x709   :  { %v3971_v40 = vpop.eup %3564  ;;  %1162 = vrot.lane.b32.xlu0 %v3841_v38, %s3676_s18  ;;  %v1019_v38 = vpop.permute.xlu1 %1018 }
 0x70a   :  { %v3567_v42 = vpop.eup %3566  ;;  %v846_v43 = vsel %vm387_vm3, %v3971_v40, 0.0  ;;  %v1024_v53 = vsel %vm878_vm4, %v1019_v38, 0 }
 0x70b   :  { %v857_v44 = vmul.f32 %v3567_v42, %v3929_v61  ;;  %847 = vadd.xlane.f32.xlu1 %v846_v43 }
 0x70d   :  { %v865_v45 = vpack.c.bf16 %v857_v44, %v857_v44  ;;  %1291 = vrot.lane.b32.xlu0 %v3785_v63, %s3677_s19 }
 0x70f   :  { %3224 = vmatmul.mubr.msk.bf16.vlgmr.msra.gmra.mrb[36].mxu1 %vm387_vm3, %v865_v45 }
 0x710   :  { %3234 = vmatpush3.bf16.msra.mxu1 %v976_v46  ;;  %3235 = vmatprep.mubr.msk.bf16.mxu1 %vm3671_vm2, %v3670_v0 }
 0x711   :  { %3245 = vmatprep.subr.bf16.mxu1 %v3670_v0 }
 0x71c   :  { %1210 = vrot.lane.b32.xlu1 %v3850_v41, %s3676_s18 }
 0x72f   :  { %v830_v48 = vpop.xlane.xlu1 %829 }
 0x730   :  { %3568 = vrcp.f32 %v830_v48 }
 0x733   :  { %v1115_v61 = vpop.permute.xlu1 %1114 }
 0x734   :  { %v1120_v2 = vsel %vm878_vm4, %v1115_v61, 0 }
 0x73a   :  { %v3569_v49 = vpop.eup %3568 }
 0x73b   :  { %v858_v50 = vmul.f32 %v3569_v49, %v3935_v62 }
 0x73d   :  { %v866_v52 = vpack.c.bf16 %v858_v50, %v858_v50 }
 0x73f   :  { %3230 = vmatmul.mubr.msk.bf16.vlgmr.msra.gmra.mrb[4].mxu0 %vm387_vm3, %v866_v52 }
 0x740   :  { %3240 = vmatpush3.bf16.msra.mxu0 %v1024_v53  ;;  %3241 = vmatprep.mubr.msk.bf16.mxu0 %vm3671_vm2, %v3670_v0 }
 0x741   :  { %3251 = vmatprep.subr.bf16.mxu0 %v3670_v0 }
 0x747   :  { %v833_v54 = vpop.xlane.xlu0 %832 }
 0x748   :  { %3570 = vrcp.f32 %v833_v54 }
 0x74b   :  { %v1067_v56 = vpop.permute.xlu0 %1066 }
 0x74c   :  { %v1072_v59 = vsel %vm878_vm4, %v1067_v56, 0 }
 0x752   :  { %v3571_v41 = vpop.eup %3570 }
 0x753   :  { %v859_v55 = vmul.f32 %v3571_v41, %v3941_v6 }
 0x755   :  { %v867_v57 = vpack.c.bf16 %v859_v55, %v859_v55 }
 0x757   :  { %3236 = vmatmul.mubr.msk.bf16.vlgmr.msra.gmra.mrb[40].mxu1 %vm387_vm3, %v867_v57 }
 0x758   :  { %3246 = vmatpush3.bf16.msra.mxu1 %v1072_v59  ;;  %3247 = vmatprep.mubr.msk.bf16.mxu1 %vm3671_vm2, %v3670_v0 }
 0x759   :  { %3257 = vmatprep.subr.bf16.mxu1 %v3670_v0 }
 0x764   :  { %v836_v27 = vpop.xlane.xlu1 %835 }
 0x765   :  { %3572 = vrcp.f32 %v836_v27 }
 0x768   :  { %v842_v26 = vpop.xlane.xlu1 %841 }
 0x769   :  { %3574 = vrcp.f32 %v842_v26 }
 0x76f   :  { %v3573_v29 = vpop.eup %3572 }
 0x770   :  { %v860_v60 = vmul.f32 %v3573_v29, %v3952_v17 }
 0x772   :  { %v868_v62 = vpack.c.bf16 %v860_v60, %v860_v60 }
 0x773   :  { %v3575_v58 = vpop.eup %3574 }
 0x774   :  { %3242 = vmatmul.mubr.msk.bf16.vlgmr.msra.gmra.mrb[8].mxu0 %vm387_vm3, %v868_v62  ;;  %v862_v3 = vmul.f32 %v3575_v58, %v3956_v19 }
 0x775   :  { %3252 = vmatpush3.bf16.msra.mxu0 %v1120_v2  ;;  %3253 = vmatprep.mubr.msk.bf16.mxu0 %vm3671_vm2, %v3670_v0 }
 0x776   :  { %3263 = vmatprep.subr.bf16.mxu0 %v3670_v0  ;;  %v870_v4 = vpack.c.bf16 %v862_v3, %v862_v3 }
 0x77c   :  { %v839_v6 = vpop.xlane.xlu0 %838  ;;  %3254 = vmatmul.mubr.msk.bf16.vlgmr.msra.gmra.mrb[12].mxu0 %vm387_vm3, %v870_v4 }
 0x77d   :  { %3576 = vrcp.f32 %v839_v6  ;;  %3265 = vmatprep.mubr.msk.bf16.mxu0 %vm3671_vm2, %v3670_v0 }
 0x780   :  { %v845_v31 = vpop.xlane.xlu0 %844 }
 0x781   :  { %3578 = vrcp.f32 %v845_v31 }
 0x784   :  { %v1163_v8 = vpop.permute.xlu0 %1162 }
 0x785   :  { %v1168_v12 = vsel %vm878_vm4, %v1163_v8, 0 }
 0x787   :  { %v3577_v5 = vpop.eup %3576 }
 0x788   :  { %v861_v7 = vmul.f32 %v3577_v5, %v3962_v25  ;;  %v1292_v35 = vpop.permute.xlu0 %1291 }
 0x78a   :  { %v869_v9 = vpack.c.bf16 %v861_v7, %v861_v7 }
 0x78b   :  { %v3579_v10 = vpop.eup %3578 }
 0x78c   :  { %3248 = vmatmul.mubr.msk.bf16.vlgmr.msra.gmra.mrb[44].mxu1 %vm387_vm3, %v869_v9  ;;  %v863_v11 = vmul.f32 %v3579_v10, %v3966_v30 }
 0x78d   :  { %3258 = vmatpush3.bf16.msra.mxu1 %v1168_v12  ;;  %3259 = vmatprep.mubr.msk.bf16.mxu1 %vm3671_vm2, %v3670_v0 }
 0x78e   :  { %3269 = vmatprep.subr.bf16.mxu1 %v3670_v0  ;;  %v871_v13 = vpack.c.bf16 %v863_v11, %v863_v11  ;;  %v2984_v11 = vld [vmem:[%s4466_s2 + $0x19] ss:$0 sm:$0xff] }
 0x794   :  { %3260 = vmatmul.mubr.msk.bf16.vlgmr.msra.gmra.mrb[48].mxu1 %vm387_vm3, %v871_v13 }
 0x795   :  { %3273 = vmatprep.mubr.msk.bf16.mxu1 %vm3671_vm2, %v3670_v0  ;;  %3270 = vmatpush3.bf16.msra.mxu1 %v1292_v35  ;;  %v3521_v35 = vld [vmem:[%s4467_s3 + $0x14] ss:$8 sps:$4 sm:$0xff]  }
 0x796   :  { %3271 = vmatprep.subr.bf16.mxu1 %v3670_v0 }
 0x798   :  { %v848_v39 = vpop.xlane.xlu1 %847 }
 0x799   :  { %3580 = vrcp.f32 %v848_v39 }
 0x79c   :  { %v1211_v14 = vpop.permute.xlu1 %1210 }
 0x79d   :  { %v1216_v15 = vsel %vm878_vm4, %v1211_v14, 0 }
 0x79e   :  { %3264 = vmatpush3.bf16.msra.mxu0 %v1216_v15 }
 0x79f   :  { %3277 = vmatprep.subr.bf16.mxu0 %v3670_v0 }
 0x7a3   :  { %v3581_v16 = vpop.eup %3580 }
 0x7a4   :  { %v864_v17 = vmul.f32 %v3581_v16, %v3971_v40 }
 0x7a6   :  { %v872_v18 = vpack.c.bf16 %v864_v17, %v864_v17 }
 0x7a8   :  { %3266 = vmatmul.mubr.msk.bf16.vlgmr.msra.gmra.mrb[16].mxu0 %vm387_vm3, %v872_v18 }
 0x7a9   :  { %3281 = vmatprep.mubr.msk.bf16.mxu0 %vm3671_vm2, %v3670_v0 }
 0x7e2   :  { %v916_v19 = vpop.f32.mrb[36].mxu1 }
 0x7e3   :  { %v3225_v20 = vpop.f32.mrb[37].mxu1 }
 0x7e4   :  { %v919_v21 = vpop.f32.mrb[38].mxu1 }
 0x7e5   :  { %v3226_v22 = vpop.f32.mrb[39].mxu1 }
 0x812   :  { %v964_v24 = vpop.f32.mrb[4].mxu0 }
 0x813   :  { %v3231_v34 = vpop.f32.mrb[5].mxu0 }
 0x814   :  { %v967_v25 = vpop.f32.mrb[6].mxu0 }
 0x815   :  { %v3232_v28 = vpop.f32.mrb[7].mxu0 }
 0x82a   :  { %v1012_v30 = vpop.f32.mrb[40].mxu1 }
 0x82b   :  { %v3237_v23 = vpop.f32.mrb[41].mxu1 }
 0x82c   :  { %v1015_v32 = vpop.f32.mrb[42].mxu1 }
 0x82d   :  { %v3238_v33 = vpop.f32.mrb[43].mxu1 }
 0x82e   :  { %v3520_v33 = vld [vmem:[%s4467_s3 + $0x4] ss:$8 sps:$4 sm:$0xff]  }
 0x82f   :  { %3278 = vmatpush3.bf16.msra.mxu0 %v3520_v33 }
 0x830   :  { %3279 = vmatprep.subr.bf16.mxu0 %v3670_v0 }
 0x833   :  { %3280 = vmatpush3.bf16.msra.mxu0 %v3521_v35 }
 0x834   :  { %3305 = vmatprep.subr.bf16.mxu0 %v3670_v0 }
 0x847   :  { %v1060_v36 = vpop.f32.mrb[8].mxu0 }
 0x848   :  { %v3458_v37 = vpack.i.bf16 %v1060_v36, %v1012_v30  ;;  %v3243_v40 = vpop.f32.mrb[9].mxu0 }
 0x849   :  { %v1063_v63 = vpop.f32.mrb[10].mxu0 }
 0x84a   :  { %v3244_v42 = vpop.f32.mrb[11].mxu0  ;;  %3459 = vrot.lane.b32.xlu1 %v3458_v37, %s3678_s20 }
 0x84f   :  { %v1156_v43 = vpop.f32.mrb[12].mxu0 }
 0x850   :  { %v3255_v44 = vpop.f32.mrb[13].mxu0 }
 0x851   :  { %v1159_v45 = vpop.f32.mrb[14].mxu0 }
 0x852   :  { %v3256_v46 = vpop.f32.mrb[15].mxu0 }
 0x853   :  { %v2985_v46 = vld [vmem:[%s4466_s2 + $0x17] ss:$0 sm:$0xff] }
 0x85f   :  { %v1108_v38 = vpop.f32.mrb[44].mxu1 }
 0x860   :  { %v3463_v48 = vpack.i.bf16 %v1156_v43, %v1108_v38  ;;  %v3249_v49 = vpop.f32.mrb[45].mxu1 }
 0x861   :  { %v1111_v50 = vpop.f32.mrb[46].mxu1 }
 0x862   :  { %3464 = vrot.lane.b32.xlu0 %v3463_v48, %s3679_s21  ;;  %v3250_v52 = vpop.f32.mrb[47].mxu1  ;;  %v2986_v50 = vld [vmem:[%s4466_s2 + $0x18] ss:$0 sm:$0xff] }
 0x866   :  { %1293 = vrot.lane.b32.xlu0 %v3793_v1, %s3677_s19 }
 0x867   :  { %v1204_v53 = vpop.f32.mrb[48].mxu1 }
 0x868   :  { %v3261_v54 = vpop.f32.mrb[49].mxu1 }
 0x869   :  { %v1207_v41 = vpop.f32.mrb[50].mxu1 }
 0x86a   :  { %v3262_v55 = vpop.f32.mrb[51].mxu1 }
 0x86b   :  { %v3522_v55 = vld [vmem:[%s4468_s4] sm:$0xff]  }
 0x87b   :  { %v1252_v56 = vpop.f32.mrb[16].mxu0 }
 0x87c   :  { %v3468_v57 = vpack.i.bf16 %v1252_v56, %v1204_v53  ;;  %v3267_v59 = vpop.f32.mrb[17].mxu0  ;;  %v3523_v56 = vld [vmem:[%s4468_s4 + $0x8] sm:$0xff]  }
 0x87d   :  { %v1255_v61 = vpop.f32.mrb[18].mxu0  ;;  %v3525_v59 = vld [vmem:[%s4468_s4 + $0x18] sm:$0xff]  }
 0x87e   :  { %v3268_v27 = vpop.f32.mrb[19].mxu0  ;;  %3469 = vrot.lane.b32.xlu1 %v3468_v57, %s3680_s22  ;;  %v3524_v57 = vld [vmem:[%s4468_s4 + $0x10] sm:$0xff]   ;;  %v3526_v61 = vld [vmem:[%s4468_s4 + $0x20] sm:$0xff]  }
 0x87f   :  { %v3527_v27 = vld [vmem:[%s4468_s4 + $0x28] sm:$0xff]  }
 0x8bc   :  { %v3460_v60 = vpop.permute.xlu1 %3459 }
 0x8bd   :  { %v3462_v62 = vunpack.i.h.bf16 %v3460_v60  ;;  %v3461_v1 = vunpack.i.l.bf16 %v3460_v60  ;;  %v2987_v60 = vld [vmem:[%s4466_s2 + $0x1c] ss:$0 sm:$0xff] }
 0x8bf   :  { %v1283_v4 = vsel %vm387_vm3, %v964_v24, %v3462_v62  ;;  %v1282_v6 = vsel %vm387_vm3, %v916_v19, %v3461_v1 }
 0x8d4   :  { %v3465_v26 = vpop.permute.xlu0 %3464 }
 0x8d5   :  { %v3467_v58 = vunpack.i.h.bf16 %v3465_v26  ;;  %v3466_v2 = vunpack.i.l.bf16 %v3465_v26  ;;  %v3528_v26 = vld [vmem:[%s4468_s4 + $0x30] sm:$0xff]  }
 0x8d7   :  { %v1286_v7 = vsel %vm1284_vm5, %v1283_v4, %v3467_v58  ;;  %v1285_v8 = vsel %vm1284_vm5, %v1282_v6, %v3466_v2 }
 0x8d8   :  { %v1294_v29 = vpop.permute.xlu0 %1293 }
 0x8d9   :  { %3272 = vmatpush3.bf16.msra.mxu1 %v1294_v29  ;;  %v3529_v29 = vld [vmem:[%s4468_s4 + $0x38] sm:$0xff]  }
 0x8da   :  { %3285 = vmatprep.subr.bf16.mxu1 %v3670_v0 }
 0x8f0   :  { %v3470_v3 = vpop.permute.xlu1 %3469 }
 0x8f1   :  { %v3472_v31 = vunpack.i.h.bf16 %v3470_v3  ;;  %v3471_v5 = vunpack.i.l.bf16 %v3470_v3 }
 0x8f3   :  { %v1289_v9 = vsel %vm1287_vm6, %v1286_v7, %v3472_v31  ;;  %v1288_v10 = vsel %vm1287_vm6, %v1285_v8, %v3471_v5 }
 0x8f4   :  { %v1290_v12 = vpack.c.bf16 %v1289_v9, %v1288_v10 }
 0x8f6   :  { %3274 = vmatmul.mubr.msk.bf16.vlgmr.msra.gmra.mrb[52].mxu1 %vm181_vm1, %v1290_v12 }
 0x8f7   :  { %3301 = vmatprep.mubr.msk.bf16.mxu1 %vm3671_vm2, %v3670_v0  ;;  %3286 = vmatpush3.bf16.msra.mxu1 %v3522_v55  ;;  %v3025_v55 = vld [vmem:[%s4466_s2 + $0x1e] ss:$0 sm:$0xff] }
 0x8f8   :  { %3287 = vmatprep.subr.bf16.mxu1 %v3670_v0 }
 0x8fb   :  { %3288 = vmatpush3.bf16.msra.mxu1 %v3523_v56 }
 0x8fc   :  { %3289 = vmatprep.subr.bf16.mxu1 %v3670_v0 }
 0x8ff   :  { %3290 = vmatpush3.bf16.msra.mxu1 %v3524_v57 }
 0x900   :  { %3291 = vmatprep.subr.bf16.mxu1 %v3670_v0 }
 0x903   :  { %3292 = vmatpush3.bf16.msra.mxu1 %v3525_v59 }
 0x904   :  { %3293 = vmatprep.subr.bf16.mxu1 %v3670_v0 }
 0x907   :  { %3294 = vmatpush3.bf16.msra.mxu1 %v3526_v61 }
 0x908   :  { %3295 = vmatprep.subr.bf16.mxu1 %v3670_v0 }
 0x90b   :  { %3296 = vmatpush3.bf16.msra.mxu1 %v3527_v27  ;;  %v3026_v27 = vld [vmem:[%s4466_s2 + $0x23] ss:$0 sm:$0xff] }
 0x90c   :  { %3297 = vmatprep.subr.bf16.mxu1 %v3670_v0 }
 0x90f   :  { %3298 = vmatpush3.bf16.msra.mxu1 %v3528_v26 }
 0x910   :  { %3299 = vmatprep.subr.bf16.mxu1 %v3670_v0 }
 0x913   :  { %3300 = vmatpush3.bf16.msra.mxu1 %v3529_v29 }
 0x914   :  { %3331 = vmatprep.subr.bf16.mxu1 %v3670_v0 }
 0x9c9   :  { %v1334_v13 = vpop.f32.mrb[52].mxu1 }
 0x9ca   :  { %v1341_v39 = vadd.f32 %v1334_v13, %v3770_v47  ;;  %v3275_v14 = vpop.f32.mrb[53].mxu1 }
 0x9cb   :  { %v1337_v15 = vpop.f32.mrb[54].mxu1 }
 0x9cc   :  { %v4045_v16 = vadd.f32 %v2984_v11, %v1341_v39  ;;  %v1342_v17 = vadd.f32 %v1337_v15, %v3774_v51  ;;  %v3276_v18 = vpop.f32.mrb[55].mxu1 }
 0x9ce   :  { %v4048_v19 = vadd.f32 %v2984_v11, %v1342_v17  ;;  %v1349_v20 = vsel %vm181_vm1, %v4045_v16, 0.0  ;;  %v2999_v17 = vld [vmem:[%s4466_s2 + $0x1a] ss:$0 sm:$0xff] }
 0x9cf   :  { %1350 = vadd.xlane.f32.xlu1 %v1349_v20 }
 0x9d0   :  { %v1352_v21 = vsel %vm181_vm1, %v4048_v19, 0.0 }
 0x9d1   :  { %1353 = vadd.xlane.f32.xlu0 %v1352_v21 }
 0xa5c   :  { %v1351_v22 = vpop.xlane.xlu1 %1350 }
 0xa5d   :  { %v1355_v24 = vmul.f32 0.03125, %v1351_v22 }
 0xa5e   :  { %v1354_v47 = vpop.xlane.xlu0 %1353 }
 0xa5f   :  { %v1357_v34 = vsub.f32 %v4045_v16, %v1355_v24  ;;  %v1356_v25 = vmul.f32 0.03125, %v1354_v47 }
 0xa61   :  { %v1358_v28 = vsub.f32 %v4048_v19, %v1356_v25  ;;  %v1359_v51 = vmul.f32 %v1357_v34, %v1357_v34 }
 0xa63   :  { %v1361_v30 = vsel %vm181_vm1, %v1359_v51, 0.0  ;;  %v1360_v23 = vmul.f32 %v1358_v28, %v1358_v28 }
 0xa64   :  { %1362 = vadd.xlane.f32.xlu0 %v1361_v30 }
 0xa65   :  { %v1364_v32 = vsel %vm181_vm1, %v1360_v23, 0.0 }
 0xa68   :  { %1365 = vadd.xlane.f32.xlu0 %v1364_v32 }
 0xaf1   :  { %v1363_v36 = vpop.xlane.xlu0 %1362 }
 0xaf2   :  { %v1367_v37 = vmul.f32 0.03125, %v1363_v36 }
 0xaf4   :  { %v1369_v40 = vadd.f32 1e-05, %v1367_v37 }
 0xaf5   :  { %v1366_v63 = vpop.xlane.xlu0 %1365 }
 0xaf6   :  { %3582 = vrsqrt.f32 %v1369_v40  ;;  %v1368_v42 = vmul.f32 0.03125, %v1366_v63  ;;  %v4132_v63 = vld [vmem:[%s4467_s3 + $0x20] ss:$8 sps:$4 sm:$0xff]  }
 0xaf8   :  { %v1370_v43 = vadd.f32 1e-05, %v1368_v42  ;;  %v4138_v42 = vld [vmem:[%s4467_s3 + $0x30] ss:$8 sps:$4 sm:$0xff]  }
 0xafa   :  { %3584 = vrsqrt.f32 %v1370_v43 }
 0xb00   :  { %v3583_v44 = vpop.eup %3582 }
 0xb01   :  { %v1373_v45 = vmul.f32 %v3583_v44, %v1357_v34 }
 0xb03   :  { %v1379_v48 = vmul.f32 %v2985_v46, %v1373_v45 }
 0xb04   :  { %v3585_v38 = vpop.eup %3584 }
 0xb05   :  { %v1374_v49 = vmul.f32 %v3585_v38, %v1358_v28  ;;  %v1385_v53 = vadd.f32 %v2986_v50, %v1379_v48 }
 0xb07   :  { %v1380_v52 = vmul.f32 %v2985_v46, %v1374_v49 }
 0xb09   :  { %v1386_v54 = vadd.f32 %v2986_v50, %v1380_v52  ;;  %v3024_v50 = vld [vmem:[%s4466_s2 + $0x1d] ss:$0 sm:$0xff] }
 0xb0b   :  { %v1387_v41 = vpack.c.bf16 %v1386_v54, %v1385_v53 }
 0xb0d   :  { %3282 = vmatmul.mubr.msk.bf16.vlgmr.msra.gmra.mrb[20].mxu0 %vm181_vm1, %v1387_v41 }
 0xb0e   :  { %3309 = vmatprep.mubr.msk.bf16.mxu0 %vm3671_vm2, %v3670_v0  ;;  %3306 = vmatpush3.bf16.msra.mxu0 %v4132_v63 }
 0xb0f   :  { %3307 = vmatprep.subr.bf16.mxu0 %v3670_v0 }
 0xb12   :  { %3308 = vmatpush3.bf16.msra.mxu0 %v4138_v42 }
 0xb13   :  { %3313 = vmatprep.subr.bf16.mxu0 %v3670_v0 }
 0xbe0   :  { %v1441_v62 = vpop.f32.mrb[20].mxu0 }
 0xbe1   :  { %v1442_v1 = vadd.f32 %v2987_v60, %v1441_v62  ;;  %v3283_v58 = vpop.f32.mrb[21].mxu0 }
 0xbe2   :  { %v1444_v2 = vpop.f32.mrb[22].mxu0 }
 0xbe3   :  { %v1448_v3 = vmul.f32 -1.702, %v1442_v1  ;;  %v1445_v4 = vadd.f32 %v2987_v60, %v1444_v2  ;;  %v3284_v6 = vpop.f32.mrb[23].mxu0 }
 0xbe5   :  { %v1450_v31 = vmul.f32 1.442695, %v1448_v3  ;;  %v1449_v5 = vmul.f32 -1.702, %v1445_v4 }
 0xbe7   :  { %3586 = vpow2.f32 %v1450_v31  ;;  %v1452_v7 = vmul.f32 1.442695, %v1449_v5 }
 0xbe9   :  { %3588 = vpow2.f32 %v1452_v7 }
 0xbf1   :  { %v3587_v8 = vpop.eup %3586 }
 0xbf2   :  { %v1454_v9 = vadd.f32 1.0, %v3587_v8 }
 0xbf3   :  { %v3589_v10 = vpop.eup %3588 }
 0xbf4   :  { %3590 = vrcp.f32 %v1454_v9  ;;  %v1455_v12 = vadd.f32 1.0, %v3589_v10 }
 0xbf6   :  { %3592 = vrcp.f32 %v1455_v12 }
 0xbfe   :  { %v3591_v11 = vpop.eup %3590 }
 0xbff   :  { %v1458_v39 = vmul.f32 %v3591_v11, %v1442_v1 }
 0xc00   :  { %v3593_v13 = vpop.eup %3592 }
 0xc01   :  { %v1459_v14 = vmul.f32 %v3593_v13, %v1445_v4 }
 0xc03   :  { %v1460_v15 = vpack.c.bf16 %v1459_v14, %v1458_v39 }
 0xc05   :  { %3302 = vmatmul.mubr.bf16.vlgmr.msra.gmra.mrb[56].mxu1 %v1460_v15 }
 0xc06   :  { %3333 = vmatprep.mubr.msk.bf16.mxu1 %vm3671_vm2, %v3670_v0 }
 0xcd8   :  { %v1543_v18 = vpop.f32.mrb[56].mxu1 }
 0xcd9   :  { %v1550_v20 = vadd.f32 %v1543_v18, %v4045_v16  ;;  %v3303_v21 = vpop.f32.mrb[57].mxu1 }
 0xcda   :  { %v1546_v22 = vpop.f32.mrb[58].mxu1 }
 0xcdb   :  { %v4116_v24 = vadd.f32 %v2999_v17, %v1550_v20  ;;  %v1551_v47 = vadd.f32 %v1546_v22, %v4048_v19  ;;  %v3304_v34 = vpop.f32.mrb[59].mxu1 }
 0xcdd   :  { %v4119_v25 = vadd.f32 %v2999_v17, %v1551_v47  ;;  %v1592_v28 = vsel %vm181_vm1, %v4116_v24, 0.0 }
 0xcde   :  { %1593 = vadd.xlane.f32.xlu1 %v1592_v28 }
 0xcdf   :  { %v1595_v51 = vsel %vm181_vm1, %v4119_v25, 0.0 }
 0xce0   :  { %1596 = vadd.xlane.f32.xlu0 %v1595_v51 }
 0xd6b   :  { %v1594_v30 = vpop.xlane.xlu1 %1593 }
 0xd6c   :  { %v1598_v23 = vmul.f32 0.03125, %v1594_v30 }
 0xd6d   :  { %v1597_v16 = vpop.xlane.xlu0 %1596 }
 0xd6e   :  { %v1600_v32 = vsub.f32 %v4116_v24, %v1598_v23  ;;  %v1599_v33 = vmul.f32 0.03125, %v1597_v16 }
 0xd70   :  { %v1601_v35 = vsub.f32 %v4119_v25, %v1599_v33  ;;  %v1602_v19 = vmul.f32 %v1600_v32, %v1600_v32 }
 0xd72   :  { %v1604_v36 = vsel %vm181_vm1, %v1602_v19, 0.0  ;;  %v1603_v37 = vmul.f32 %v1601_v35, %v1601_v35 }
 0xd73   :  { %1605 = vadd.xlane.f32.xlu1 %v1604_v36 }
 0xd74   :  { %v1607_v40 = vsel %vm181_vm1, %v1603_v37, 0.0 }
 0xd75   :  { %1608 = vadd.xlane.f32.xlu0 %v1607_v40 }
 0xe00   :  { %v1606_v43 = vpop.xlane.xlu1 %1605 }
 0xe01   :  { %v1610_v44 = vmul.f32 0.03125, %v1606_v43  ;;  %v3644_v43 = vld [vmem:[%s4466_s2 + $0x14] ss:$0 sm:$0xff] }
 0xe02   :  { %v1609_v45 = vpop.xlane.xlu0 %1608 }
 0xe03   :  { %v1612_v46 = vadd.f32 1e-05, %v1610_v44  ;;  %v1611_v38 = vmul.f32 0.03125, %v1609_v45 }
 0xe05   :  { %3594 = vrsqrt.f32 %v1612_v46  ;;  %v1613_v48 = vadd.f32 1e-05, %v1611_v38 }
 0xe07   :  { %3596 = vrsqrt.f32 %v1613_v48 }
 0xe0f   :  { %v3595_v49 = vpop.eup %3594 }
 0xe10   :  { %v1616_v52 = vmul.f32 %v3595_v49, %v1600_v32 }
 0xe11   :  { %v3597_v53 = vpop.eup %3596 }
 0xe12   :  { %v1622_v54 = vmul.f32 %v3024_v50, %v1616_v52  ;;  %v1617_v41 = vmul.f32 %v3597_v53, %v1601_v35 }
 0xe14   :  { %v1623_v56 = vmul.f32 %v3024_v50, %v1617_v41  ;;  %v1628_v57 = vadd.f32 %v3025_v55, %v1622_v54 }
 0xe16   :  { %v1629_v59 = vadd.f32 %v3025_v55, %v1623_v56 }
 0xe18   :  { %v1630_v61 = vpack.c.bf16 %v1629_v59, %v1628_v57 }
 0xe1a   :  { %3310 = vmatmul.mubr.msk.bf16.vlgmr.msra.gmra.mrb[24].mxu0 %vm181_vm1, %v1630_v61 }
 0xe1b   :  { %3315 = vmatprep.mubr.msk.bf16.mxu0 %vm3671_vm2, %v3670_v0 }
 0xeed   :  { %v1684_v26 = vpop.f32.mrb[24].mxu0 }
 0xeee   :  { %v3311_v29 = vpop.f32.mrb[25].mxu0  ;;  %v1685_v62 = vadd.f32 %v3026_v27, %v1684_v26 }
 0xeef   :  { %v1687_v60 = vpop.f32.mrb[26].mxu0 }
 0xef0   :  { %v1688_v1 = vadd.f32 %v3026_v27, %v1687_v60  ;;  %v3312_v58 = vpop.f32.mrb[27].mxu0  ;;  %v4158_v3 = vpack.c.bf16 %v1685_v62, %v1685_v62 }
 0xef2   :  { %v3478_v2 = vpack.i.bf16 %v1688_v1, %v1685_v62  ;;  %v4162_v4 = vpack.c.bf16 %v1688_v1, %v1688_v1 }
 0xef4   :  { %3479 = vrot.lane.b32.xlu0 %v3478_v2, %s3674_s14  ;;  %3474 = vrot.lane.b32.xlu1 %v3478_v2, %s3672_s12 }
 0xef8   :  { %3484 = vrot.lane.b32.xlu1 %v3478_v2, %s3673_s13 }
 0xefc   :  { %1720 = vrot.lane.b32.xlu1 %v4158_v3, %s3675_s15 }
 0xf00   :  { %1769 = vrot.lane.b32.xlu1 %v4162_v4, %s3675_s15 }
 0xf66   :  { %v3480_v6 = vpop.permute.xlu0 %3479  ;;  %v3475_v31 = vpop.permute.xlu1 %3474 }
 0xf67   :  { %v3477_v5 = vunpack.i.h.bf16 %v3475_v31  ;;  %v3476_v7 = vunpack.i.l.bf16 %v3475_v31  ;;  %v3482_v8 = vunpack.i.h.bf16 %v3480_v6  ;;  %v3481_v9 = vunpack.i.l.bf16 %v3480_v6 }
 0xf69   :  { %v4166_v10 = vpack.c.bf16 %v3477_v5, %v3477_v5  ;;  %v4168_v12 = vpack.c.bf16 %v3476_v7, %v3476_v7  ;;  %v4174_v13 = vpack.c.bf16 %v3482_v8, %v3482_v8  ;;  %v4176_v39 = vpack.c.bf16 %v3481_v9, %v3481_v9 }
 0xf6a   :  { %v3485_v11 = vpop.permute.xlu1 %3484 }
 0xf6b   :  { %1818 = vrot.lane.b32.xlu0 %v4168_v12, %s3675_s15  ;;  %1867 = vrot.lane.b32.xlu1 %v4166_v10, %s3675_s15  ;;  %v3487_v14 = vunpack.i.h.bf16 %v3485_v11  ;;  %v3486_v15 = vunpack.i.l.bf16 %v3485_v11 }
 0xf6d   :  { %v4183_v20 = vpack.c.bf16 %v3487_v14, %v3487_v14  ;;  %v4185_v21 = vpack.c.bf16 %v3486_v15, %v3486_v15 }
 0xf6e   :  { %v1721_v17 = vpop.permute.xlu1 %1720 }
 0xf6f   :  { %v1726_v18 = vsel %vm387_vm3, %v1721_v17, 0  ;;  %1916 = vrot.lane.b32.xlu0 %v4176_v39, %s3675_s15  ;;  %1965 = vrot.lane.b32.xlu1 %v4174_v13, %s3675_s15 }
 0xf70   :  { %3314 = vmatpush3.bf16.xpose.msra.mxu0 %v1726_v18 }
 0xf71   :  { %3319 = vmatprep.subr.bf16.mxu0 %v3670_v0 }
 0xf72   :  { %v1770_v22 = vpop.permute.xlu1 %1769 }
 0xf73   :  { %2014 = vrot.lane.b32.xlu0 %v4185_v21, %s3675_s15  ;;  %2063 = vrot.lane.b32.xlu1 %v4183_v20, %s3675_s15  ;;  %v1775_v47 = vsel %vm387_vm3, %v1770_v22, 0 }
 0xf77   :  { %3316 = vmatmul.mubr.msk.bf16.vlgmr.msra.gmra.mrb[28].mxu0 %vm387_vm3, %v4158_v3 }
 0xf78   :  { %3320 = vmatpush3.bf16.xpose.msra.mxu0 %v1775_v47  ;;  %3321 = vmatprep.mubr.msk.bf16.mxu0 %vm3671_vm2, %v3670_v0 }
 0xf79   :  { %3325 = vmatprep.subr.bf16.mxu0 %v3670_v0 }
 0xf7f   :  { %3322 = vmatmul.mubr.msk.bf16.vlgmr.msra.gmra.mrb[32].mxu0 %vm387_vm3, %v4162_v4 }
 0xf80   :  { %3327 = vmatprep.mubr.msk.bf16.mxu0 %vm3671_vm2, %v3670_v0 }
 0xfdd   :  { %v1819_v34 = vpop.permute.xlu0 %1818  ;;  %v1868_v28 = vpop.permute.xlu1 %1867 }
 0xfde   :  { %v1824_v51 = vsel %vm387_vm3, %v1819_v34, 0  ;;  %v1873_v30 = vsel %vm387_vm3, %v1868_v28, 0 }
 0xfdf   :  { %3326 = vmatpush3.bf16.xpose.msra.mxu0 %v1824_v51  ;;  %3332 = vmatpush3.bf16.xpose.msra.mxu1 %v1873_v30 }
 0xfe0   :  { %3337 = vmatprep.subr.bf16.mxu0 %v3670_v0  ;;  %3343 = vmatprep.subr.bf16.mxu1 %v3670_v0 }
 0xfe1   :  { %v1917_v23 = vpop.permute.xlu0 %1916  ;;  %v1966_v16 = vpop.permute.xlu1 %1965 }
 0xfe2   :  { %v1922_v32 = vsel %vm387_vm3, %v1917_v23, 0  ;;  %v1971_v33 = vsel %vm387_vm3, %v1966_v16, 0 }
 0xfe5   :  { %v2015_v35 = vpop.permute.xlu0 %2014  ;;  %v2064_v19 = vpop.permute.xlu1 %2063 }
 0xfe6   :  { %3328 = vmatmul.mubr.msk.bf16.vlgmr.msra.gmra.mrb[36].mxu0 %vm387_vm3, %v4168_v12  ;;  %3334 = vmatmul.mubr.msk.bf16.vlgmr.msra.gmra.mrb[60].mxu1 %vm387_vm3, %v4166_v10  ;;  %v2020_v36 = vsel %vm387_vm3, %v2015_v35, 0  ;;  %v2069_v37 = vsel %vm387_vm3, %v2064_v19, 0 }
 0xfe7   :  { %3338 = vmatpush3.bf16.xpose.msra.mxu0 %v1922_v32  ;;  %3344 = vmatpush3.bf16.xpose.msra.mxu1 %v1971_v33 }
 0xfe8   :  { %3339 = vmatprep.mubr.msk.bf16.mxu0 %vm3671_vm2, %v3670_v0  ;;  %3345 = vmatprep.mubr.msk.bf16.mxu1 %vm3671_vm2, %v3670_v0 }
 0xfe9   :  { %3349 = vmatprep.subr.bf16.mxu0 %v3670_v0  ;;  %3355 = vmatprep.subr.bf16.mxu1 %v3670_v0 }
 0xfee   :  { %3340 = vmatmul.mubr.msk.bf16.vlgmr.msra.gmra.mrb[40].mxu0 %vm387_vm3, %v4176_v39  ;;  %3346 = vmatmul.mubr.msk.bf16.vlgmr.msra.gmra.mrb[64].mxu1 %vm387_vm3, %v4174_v13 }
 0xfef   :  { %3350 = vmatpush3.bf16.xpose.msra.mxu0 %v2020_v36  ;;  %3356 = vmatpush3.bf16.xpose.msra.mxu1 %v2069_v37 }
 0xff0   :  { %3351 = vmatprep.mubr.msk.bf16.mxu0 %vm3671_vm2, %v3670_v0  ;;  %3357 = vmatprep.mubr.msk.bf16.mxu1 %vm3671_vm2, %v3670_v0 }
 0xff1   :  { %3367 = vmatprep.subr.bf16.mxu1 %v3670_v0  ;;  %3361 = vmatprep.subr.bf16.mxu0 %v3670_v0 }
 0xff6   :  { %3352 = vmatmul.mubr.msk.bf16.vlgmr.msra.gmra.mrb[44].mxu0 %vm387_vm3, %v4185_v21  ;;  %3358 = vmatmul.mubr.msk.bf16.vlgmr.msra.gmra.mrb[68].mxu1 %vm387_vm3, %v4183_v20 }
 0xff7   :  { %3363 = vmatprep.mubr.msk.bf16.mxu0 %vm3671_vm2, %v3670_v0  ;;  %3369 = vmatprep.mubr.msk.bf16.mxu1 %vm3671_vm2, %v3670_v0 }
0x104a   :  { %v1762_v40 = vpop.f32.mrb[28].mxu0 }
0x104b   :  { %v1763_v44 = vadd.f32 %v3644_v43, %v1762_v40  ;;  %v3317_v45 = vpop.f32.mrb[29].mxu0 }
0x104c   :  { %v1765_v46 = vpop.f32.mrb[30].mxu0 }
0x104d   :  { %v3318_v38 = vpop.f32.mrb[31].mxu0  ;;  %v2111_v48 = vsel %vm387_vm3, %v1763_v44, -inf }
0x104e   :  { %2112 = vmax.xlane.f32.xlu0 %v2111_v48 }
0x1052   :  { %v1811_v49 = vpop.f32.mrb[32].mxu0 }
0x1053   :  { %v1812_v50 = vadd.f32 %v3644_v43, %v1811_v49  ;;  %v3323_v52 = vpop.f32.mrb[33].mxu0 }
0x1054   :  { %v1814_v53 = vpop.f32.mrb[34].mxu0 }
0x1055   :  { %v3324_v54 = vpop.f32.mrb[35].mxu0  ;;  %v2114_v41 = vsel %vm387_vm3, %v1812_v50, -inf }
0x1056   :  { %2115 = vmax.xlane.f32.xlu1 %v2114_v41 }
0x10b9   :  { %v1860_v55 = vpop.f32.mrb[36].mxu0  ;;  %v1909_v56 = vpop.f32.mrb[60].mxu1 }
0x10ba   :  { %v1861_v57 = vadd.f32 %v3644_v43, %v1860_v55  ;;  %v3329_v59 = vpop.f32.mrb[37].mxu0  ;;  %v3335_v61 = vpop.f32.mrb[61].mxu1  ;;  %v1910_v29 = vadd.f32 %v3644_v43, %v1909_v56 }
0x10bb   :  { %v1863_v27 = vpop.f32.mrb[38].mxu0  ;;  %v1912_v26 = vpop.f32.mrb[62].mxu1 }
0x10bc   :  { %v3330_v60 = vpop.f32.mrb[39].mxu0  ;;  %v3336_v62 = vpop.f32.mrb[63].mxu1  ;;  %v2117_v1 = vsel %vm387_vm3, %v1861_v57, -inf  ;;  %v2120_v58 = vsel %vm387_vm3, %v1910_v29, -inf }
0x10bd   :  { %2118 = vmax.xlane.f32.xlu0 %v2117_v1 }
0x10c1   :  { %v1958_v2 = vpop.f32.mrb[40].mxu0  ;;  %2121 = vmax.xlane.f32.xlu0 %v2120_v58  ;;  %v2007_v6 = vpop.f32.mrb[64].mxu1 }
0x10c2   :  { %v4245_v31 = vadd.f32 %v3644_v43, %v1958_v2  ;;  %v2008_v5 = vadd.f32 %v3644_v43, %v2007_v6  ;;  %v3341_v7 = vpop.f32.mrb[41].mxu0  ;;  %v3347_v8 = vpop.f32.mrb[65].mxu1 }
0x10c3   :  { %v1961_v9 = vpop.f32.mrb[42].mxu0  ;;  %v2010_v11 = vpop.f32.mrb[66].mxu1 }
0x10c4   :  { %v3342_v14 = vpop.f32.mrb[43].mxu0  ;;  %v3348_v15 = vpop.f32.mrb[67].mxu1  ;;  %v2123_v17 = vsel %vm387_vm3, %v4245_v31, -inf  ;;  %v2126_v18 = vsel %vm387_vm3, %v2008_v5, -inf }
0x10c5   :  { %2124 = vmax.xlane.f32.xlu0 %v2123_v17  ;;  %2127 = vmax.xlane.f32.xlu1 %v2126_v18 }
0x10c9   :  { %v2056_v22 = vpop.f32.mrb[44].mxu0  ;;  %v2105_v47 = vpop.f32.mrb[68].mxu1 }
0x10ca   :  { %v4250_v34 = vadd.f32 %v3644_v43, %v2056_v22  ;;  %v3353_v28 = vpop.f32.mrb[45].mxu0  ;;  %v3359_v51 = vpop.f32.mrb[69].mxu1  ;;  %v2106_v37 = vadd.f32 %v3644_v43, %v2105_v47 }
0x10cb   :  { %v2059_v30 = vpop.f32.mrb[46].mxu0  ;;  %v2108_v23 = vpop.f32.mrb[70].mxu1 }
0x10cc   :  { %v3354_v16 = vpop.f32.mrb[47].mxu0  ;;  %v3360_v32 = vpop.f32.mrb[71].mxu1  ;;  %v2129_v33 = vsel %vm387_vm3, %v4250_v34, -inf  ;;  %v2132_v40 = vsel %vm387_vm3, %v2106_v37, -inf }
0x10cd   :  { %2130 = vmax.xlane.f32.xlu0 %v2129_v33 }
0x10d6   :  { %2255 = vrot.lane.b32.xlu1 %v4162_v4, %s3676_s18 }
0x10da   :  { %2303 = vrot.lane.b32.xlu1 %v4168_v12, %s3676_s18 }
0x10db   :  { %v2113_v35 = vpop.xlane.xlu0 %2112 }
0x10dc   :  { %v2135_v19 = vsub.f32 %v1763_v44, %v2113_v35 }
0x10de   :  { %v2143_v36 = vmul.f32 1.442695, %v2135_v19 }
0x10e0   :  { %3598 = vpow2.f32 %v2143_v36 }
0x10e3   :  { %2207 = vrot.lane.b32.xlu0 %v4158_v3, %s3676_s18  ;;  %v2116_v4 = vpop.xlane.xlu1 %2115 }
0x10e4   :  { %v2136_v12 = vsub.f32 %v1812_v50, %v2116_v4 }
0x10e6   :  { %v2145_v3 = vmul.f32 1.442695, %v2136_v12 }
0x10e8   :  { %3600 = vpow2.f32 %v2145_v3 }
0x10ea   :  { %v4261_v45 = vpop.eup %3598 }
0x10eb   :  { %v2159_v46 = vsel %vm387_vm3, %v4261_v45, 0.0 }
0x10f2   :  { %v4267_v44 = vpop.eup %3600 }
0x10f3   :  { %v2162_v43 = vsel %vm387_vm3, %v4267_v44, 0.0 }
0x10fe   :  { %2133 = vmax.xlane.f32.xlu1 %v2132_v40 }
0x1102   :  { %2160 = vadd.xlane.f32.xlu0 %v2159_v46 }
0x110f   :  { %2351 = vrot.lane.b32.xlu1 %v4166_v10, %s3676_s18 }
0x1133   :  { %2163 = vadd.xlane.f32.xlu1 %v2162_v43 }
0x1144   :  { %2447 = vrot.lane.b32.xlu1 %v4174_v13, %s3676_s18 }
0x114a   :  { %v2119_v38 = vpop.xlane.xlu0 %2118 }
0x114b   :  { %v2137_v48 = vsub.f32 %v1861_v57, %v2119_v38 }
0x114d   :  { %v2147_v49 = vmul.f32 1.442695, %v2137_v48 }
0x114e   :  { %v2122_v52 = vpop.xlane.xlu0 %2121 }
0x114f   :  { %3602 = vpow2.f32 %v2147_v49  ;;  %v2138_v53 = vsub.f32 %v1910_v29, %v2122_v52 }
0x1151   :  { %v2149_v54 = vmul.f32 1.442695, %v2138_v53 }
0x1152   :  { %v2128_v10 = vpop.xlane.xlu1 %2127  ;;  %v2125_v50 = vpop.xlane.xlu0 %2124 }
0x1153   :  { %v2140_v41 = vsub.f32 %v2008_v5, %v2128_v10  ;;  %3604 = vpow2.f32 %v2149_v54  ;;  %v2139_v58 = vsub.f32 %v4245_v31, %v2125_v50 }
0x1155   :  { %v2153_v13 = vmul.f32 1.442695, %v2140_v41  ;;  %v2151_v2 = vmul.f32 1.442695, %v2139_v58 }
0x1156   :  { %v2256_v55 = vpop.permute.xlu1 %2255 }
0x1157   :  { %v2261_v56 = vsel %vm878_vm4, %v2256_v55, 0  ;;  %3606 = vpow2.f32 %v2153_v13 }
0x1158   :  { %3368 = vmatpush3.bf16.msra.mxu1 %v2261_v56  ;;  %3608 = vpow2.f32 %v2151_v2 }
0x1159   :  { %v4274_v59 = vpop.eup %3602  ;;  %3379 = vmatprep.subr.bf16.mxu1 %v3670_v0 }
0x115a   :  { %v2131_v61 = vpop.xlane.xlu0 %2130  ;;  %v2165_v57 = vsel %vm387_vm3, %v4274_v59, 0.0  ;;  %v2304_v7 = vpop.permute.xlu1 %2303 }
0x115b   :  { %2166 = vadd.xlane.f32.xlu0 %v2165_v57  ;;  %v2141_v6 = vsub.f32 %v4250_v34, %v2131_v61  ;;  %v2309_v51 = vsel %vm878_vm4, %v2304_v7, 0 }
0x115d   :  { %v4281_v29 = vpop.eup %3604  ;;  %v2155_v5 = vmul.f32 1.442695, %v2141_v6 }
0x115e   :  { %v2208_v27 = vpop.permute.xlu0 %2207  ;;  %v2168_v60 = vsel %vm387_vm3, %v4281_v29, 0.0 }
0x115f   :  { %v2213_v26 = vsel %vm878_vm4, %v2208_v27, 0  ;;  %3610 = vpow2.f32 %v2155_v5 }
0x1160   :  { %3362 = vmatpush3.bf16.msra.mxu0 %v2213_v26 }
0x1161   :  { %3373 = vmatprep.subr.bf16.mxu0 %v3670_v0  ;;  %v4285_v62 = vpop.eup %3606 }
0x1162   :  { %v2174_v1 = vsel %vm387_vm3, %v4285_v62, 0.0  ;;  %v4293_v9 = vpop.eup %3608 }
0x1163   :  { %v2171_v17 = vsel %vm387_vm3, %v4293_v9, 0.0 }
0x1168   :  { %2169 = vadd.xlane.f32.xlu1 %v2168_v60 }
0x1169   :  { %v4297_v18 = vpop.eup %3610 }
0x116c   :  { %2175 = vadd.xlane.f32.xlu1 %v2174_v1 }
0x1171   :  { %2399 = vrot.lane.b32.xlu0 %v4176_v39, %s3676_s18  ;;  %v2177_v39 = vsel %vm387_vm3, %v4297_v18, 0.0 }
0x118b   :  { %v2134_v8 = vpop.xlane.xlu1 %2133 }
0x118c   :  { %v2142_v11 = vsub.f32 %v2106_v37, %v2134_v8 }
0x118e   :  { %v2157_v14 = vmul.f32 1.442695, %v2142_v11 }
0x118f   :  { %v2161_v15 = vpop.xlane.xlu0 %2160  ;;  %v2352_v30 = vpop.permute.xlu1 %2351 }
0x1190   :  { %3612 = vpow2.f32 %v2157_v14  ;;  %2172 = vadd.xlane.f32.xlu0 %v2171_v17  ;;  %v2357_v35 = vsel %vm878_vm4, %v2352_v30, 0 }
0x1191   :  { %3614 = vrcp.f32 %v2161_v15 }
0x1194   :  { %2178 = vadd.xlane.f32.xlu0 %v2177_v39 }
0x119a   :  { %v4301_v31 = vpop.eup %3612 }
0x119b   :  { %v3615_v22 = vpop.eup %3614  ;;  %v2180_v47 = vsel %vm387_vm3, %v4301_v31, 0.0 }
0x119c   :  { %v2191_v34 = vmul.f32 %v3615_v22, %v4261_v45  ;;  %2181 = vadd.xlane.f32.xlu1 %v2180_v47 }
0x119e   :  { %v2199_v28 = vpack.c.bf16 %v2191_v34, %v2191_v34 }
0x11a0   :  { %3364 = vmatmul.mubr.msk.bf16.vlgmr.msra.gmra.mrb[48].mxu0 %vm387_vm3, %v2199_v28 }
0x11a1   :  { %3374 = vmatpush3.bf16.msra.mxu0 %v2309_v51  ;;  %3375 = vmatprep.mubr.msk.bf16.mxu0 %vm3671_vm2, %v3670_v0 }
0x11a2   :  { %3385 = vmatprep.subr.bf16.mxu0 %v3670_v0 }
0x11aa   :  { %2495 = vrot.lane.b32.xlu0 %v4185_v21, %s3676_s18 }
0x11ad   :  { %2543 = vrot.lane.b32.xlu1 %v4183_v20, %s3676_s18 }
0x11ae   :  { %2622 = vrot.lane.b32.xlu0 %v4132_v63, %s3677_s19 }
0x11c0   :  { %v2164_v23 = vpop.xlane.xlu1 %2163 }
0x11c1   :  { %3616 = vrcp.f32 %v2164_v23 }
0x11c4   :  { %v2448_v63 = vpop.permute.xlu1 %2447 }
0x11c5   :  { %v2453_v43 = vsel %vm878_vm4, %v2448_v63, 0 }
0x11cb   :  { %v3617_v16 = vpop.eup %3616 }
0x11cc   :  { %v2192_v32 = vmul.f32 %v3617_v16, %v4267_v44 }
0x11ce   :  { %v2200_v33 = vpack.c.bf16 %v2192_v32, %v2192_v32 }
0x11d0   :  { %3370 = vmatmul.mubr.msk.bf16.vlgmr.msra.gmra.mrb[72].mxu1 %vm387_vm3, %v2200_v33 }
0x11d1   :  { %3380 = vmatpush3.bf16.msra.mxu1 %v2357_v35  ;;  %3381 = vmatprep.mubr.msk.bf16.mxu1 %vm3671_vm2, %v3670_v0 }
0x11d2   :  { %3391 = vmatprep.subr.bf16.mxu1 %v3670_v0 }
0x11e8   :  { %v2167_v20 = vpop.xlane.xlu0 %2166 }
0x11e9   :  { %3618 = vrcp.f32 %v2167_v20 }
0x11ec   :  { %v2400_v36 = vpop.permute.xlu0 %2399 }
0x11ed   :  { %v2405_v45 = vsel %vm878_vm4, %v2400_v36, 0 }
0x11f3   :  { %v3619_v21 = vpop.eup %3618 }
0x11f4   :  { %v2193_v19 = vmul.f32 %v3619_v21, %v4274_v59 }
0x11f5   :  { %v2170_v37 = vpop.xlane.xlu1 %2169 }
0x11f6   :  { %3620 = vrcp.f32 %v2170_v37  ;;  %v2201_v40 = vpack.c.bf16 %v2193_v19, %v2193_v19 }
0x11f8   :  { %3376 = vmatmul.mubr.msk.bf16.vlgmr.msra.gmra.mrb[52].mxu0 %vm387_vm3, %v2201_v40 }
0x11f9   :  { %3386 = vmatpush3.bf16.msra.mxu0 %v2405_v45  ;;  %v2176_v46 = vpop.xlane.xlu1 %2175  ;;  %3387 = vmatprep.mubr.msk.bf16.mxu0 %vm3671_vm2, %v3670_v0 }
0x11fa   :  { %3622 = vrcp.f32 %v2176_v46  ;;  %3397 = vmatprep.subr.bf16.mxu0 %v3670_v0 }
0x1200   :  { %v3621_v4 = vpop.eup %3620 }
0x1201   :  { %v2194_v12 = vmul.f32 %v3621_v4, %v4281_v29 }
0x1203   :  { %v2202_v3 = vpack.c.bf16 %v2194_v12, %v2194_v12 }
0x1204   :  { %v3623_v44 = vpop.eup %3622 }
0x1205   :  { %3382 = vmatmul.mubr.msk.bf16.vlgmr.msra.gmra.mrb[76].mxu1 %vm387_vm3, %v2202_v3  ;;  %v2196_v38 = vmul.f32 %v3623_v44, %v4285_v62 }
0x1206   :  { %3392 = vmatpush3.bf16.msra.mxu1 %v2453_v43  ;;  %3393 = vmatprep.mubr.msk.bf16.mxu1 %vm3671_vm2, %v3670_v0 }
0x1207   :  { %3403 = vmatprep.subr.bf16.mxu1 %v3670_v0  ;;  %v2204_v48 = vpack.c.bf16 %v2196_v38, %v2196_v38 }
0x120d   :  { %3394 = vmatmul.mubr.msk.bf16.vlgmr.msra.gmra.mrb[80].mxu1 %vm387_vm3, %v2204_v48 }
0x120e   :  { %3405 = vmatprep.mubr.msk.bf16.mxu1 %vm3671_vm2, %v3670_v0 }
0x121d   :  { %v2173_v49 = vpop.xlane.xlu0 %2172 }
0x121e   :  { %3624 = vrcp.f32 %v2173_v49 }
0x1221   :  { %v2179_v52 = vpop.xlane.xlu0 %2178 }
0x1222   :  { %3626 = vrcp.f32 %v2179_v52 }
0x1225   :  { %v2496_v50 = vpop.permute.xlu0 %2495 }
0x1226   :  { %v2501_v56 = vsel %vm878_vm4, %v2496_v50, 0 }
0x1228   :  { %v3625_v53 = vpop.eup %3624 }
0x1229   :  { %v2195_v10 = vmul.f32 %v3625_v53, %v4293_v9  ;;  %v2182_v54 = vpop.xlane.xlu1 %2181  ;;  %v2623_v15 = vpop.permute.xlu0 %2622 }
0x122a   :  { %3628 = vrcp.f32 %v2182_v54 }
0x122b   :  { %v2203_v41 = vpack.c.bf16 %v2195_v10, %v2195_v10 }
0x122c   :  { %v3627_v55 = vpop.eup %3626 }
0x122d   :  { %3388 = vmatmul.mubr.msk.bf16.vlgmr.msra.gmra.mrb[56].mxu0 %vm387_vm3, %v2203_v41  ;;  %v2544_v59 = vpop.permute.xlu1 %2543  ;;  %v2197_v61 = vmul.f32 %v3627_v55, %v4297_v18 }
0x122e   :  { %3398 = vmatpush3.bf16.msra.mxu0 %v2501_v56  ;;  %v2549_v13 = vsel %vm878_vm4, %v2544_v59, 0  ;;  %3399 = vmatprep.mubr.msk.bf16.mxu0 %vm3671_vm2, %v3670_v0  ;;  %v3047_v56 = vld [vmem:[%s4466_s2 + $0x21] ss:$0 sm:$0xff] }
0x122f   :  { %3404 = vmatpush3.bf16.msra.mxu1 %v2549_v13  ;;  %3409 = vmatprep.subr.bf16.mxu0 %v3670_v0  ;;  %v2205_v57 = vpack.c.bf16 %v2197_v61, %v2197_v61 }
0x1230   :  { %3417 = vmatprep.subr.bf16.mxu1 %v3670_v0 }
0x1234   :  { %v3629_v27 = vpop.eup %3628 }
0x1235   :  { %v2198_v26 = vmul.f32 %v3629_v27, %v4301_v31  ;;  %3400 = vmatmul.mubr.msk.bf16.vlgmr.msra.gmra.mrb[60].mxu0 %vm387_vm3, %v2205_v57 }
0x1236   :  { %3413 = vmatprep.mubr.msk.bf16.mxu0 %vm3671_vm2, %v3670_v0  ;;  %3410 = vmatpush3.bf16.msra.mxu0 %v2623_v15 }
0x1237   :  { %v2206_v29 = vpack.c.bf16 %v2198_v26, %v2198_v26  ;;  %3411 = vmatprep.subr.bf16.mxu0 %v3670_v0 }
0x1239   :  { %3406 = vmatmul.mubr.msk.bf16.vlgmr.msra.gmra.mrb[84].mxu1 %vm387_vm3, %v2206_v29 }
0x123a   :  { %3421 = vmatprep.mubr.msk.bf16.mxu1 %vm3671_vm2, %v3670_v0 }
0x1273   :  { %v2249_v60 = vpop.f32.mrb[48].mxu0 }
0x1274   :  { %v3365_v62 = vpop.f32.mrb[49].mxu0 }
0x1275   :  { %v2252_v1 = vpop.f32.mrb[50].mxu0 }
0x1276   :  { %v3366_v58 = vpop.f32.mrb[51].mxu0 }
0x12a3   :  { %v2297_v2 = vpop.f32.mrb[72].mxu1 }
0x12a4   :  { %v3371_v6 = vpop.f32.mrb[73].mxu1 }
0x12a5   :  { %v2300_v5 = vpop.f32.mrb[74].mxu1 }
0x12a6   :  { %v3372_v7 = vpop.f32.mrb[75].mxu1 }
0x12cb   :  { %v2345_v8 = vpop.f32.mrb[52].mxu0 }
0x12cc   :  { %v3377_v9 = vpop.f32.mrb[53].mxu0 }
0x12cd   :  { %v2348_v11 = vpop.f32.mrb[54].mxu0 }
0x12ce   :  { %v3378_v14 = vpop.f32.mrb[55].mxu0 }
0x12d8   :  { %v2393_v17 = vpop.f32.mrb[76].mxu1 }
0x12d9   :  { %v3488_v18 = vpack.i.bf16 %v2393_v17, %v2345_v8  ;;  %v3383_v39 = vpop.f32.mrb[77].mxu1  ;;  %v3532_v17 = vld [vmem:[%s4467_s3 + $0x24] ss:$8 sps:$4 sm:$0xff]  }
0x12da   :  { %v2396_v31 = vpop.f32.mrb[78].mxu1  ;;  %3418 = vmatpush3.bf16.msra.mxu1 %v3532_v17 }
0x12db   :  { %3489 = vrot.lane.b32.xlu1 %v3488_v18, %s3678_s20  ;;  %v3384_v22 = vpop.f32.mrb[79].mxu1  ;;  %v3533_v18 = vld [vmem:[%s4467_s3 + $0x34] ss:$8 sps:$4 sm:$0xff]   ;;  %3419 = vmatprep.subr.bf16.mxu1 %v3670_v0 }
0x12de   :  { %3420 = vmatpush3.bf16.msra.mxu1 %v3533_v18 }
0x12e0   :  { %v2489_v47 = vpop.f32.mrb[80].mxu1 }
0x12e1   :  { %v3395_v34 = vpop.f32.mrb[81].mxu1 }
0x12e2   :  { %v2492_v28 = vpop.f32.mrb[82].mxu1 }
0x12e3   :  { %v3396_v51 = vpop.f32.mrb[83].mxu1 }
0x1300   :  { %v2441_v30 = vpop.f32.mrb[56].mxu0 }
0x1301   :  { %v3493_v23 = vpack.i.bf16 %v2489_v47, %v2441_v30  ;;  %v3389_v16 = vpop.f32.mrb[57].mxu0 }
0x1302   :  { %v2444_v32 = vpop.f32.mrb[58].mxu0 }
0x1303   :  { %v3390_v33 = vpop.f32.mrb[59].mxu0  ;;  %3494 = vrot.lane.b32.xlu0 %v3493_v23, %s3679_s21  ;;  %v3048_v23 = vld [vmem:[%s4466_s2 + $0x1f] ss:$0 sm:$0xff]  ;;  %s3681_s21 = smov [#allocation2]  }
0x1307   :  { %2624 = vrot.lane.b32.xlu0 %v4138_v42, %s3677_s19 }
0x1308   :  { %v2537_v35 = vpop.f32.mrb[60].mxu0 }
0x1309   :  { %v3401_v20 = vpop.f32.mrb[61].mxu0 }
0x130a   :  { %v2540_v63 = vpop.f32.mrb[62].mxu0 }
0x130b   :  { %v3402_v21 = vpop.f32.mrb[63].mxu0 }
0x130c   :  { %v2585_v19 = vpop.f32.mrb[84].mxu1 }
0x130d   :  { %v3498_v36 = vpack.i.bf16 %v2585_v19, %v2537_v35  ;;  %v3407_v37 = vpop.f32.mrb[85].mxu1  ;;  %v3049_v35 = vld [vmem:[%s4466_s2 + $0x20] ss:$0 sm:$0xff] }
0x130e   :  { %v2588_v40 = vpop.f32.mrb[86].mxu1  ;;  %v3535_v37 = vld [vmem:[%s4468_s4 + $0x48] sm:$0xff]  }
0x130f   :  { %3499 = vrot.lane.b32.xlu1 %v3498_v36, %s3680_s22  ;;  %v3408_v45 = vpop.f32.mrb[87].mxu1  ;;  %v3534_v36 = vld [vmem:[%s4468_s4 + $0x40] sm:$0xff]   ;;  %v3536_v40 = vld [vmem:[%s4468_s4 + $0x50] sm:$0xff]   ;;  %s2935_s22 = sshll.u32 %s3681_s21, 4  ;;  %s2936_s22 = int_to_ptr.vmem [resolvable:$true] %s2935_s22 }
0x1310   :  { %v3537_v45 = vld [vmem:[%s4468_s4 + $0x58] sm:$0xff]   ;;  %s3645_s25 = scalar_lea.vmem %s2936_s22, 64  ;;  %p3650_p1 = scmp.lt.s32.totalorder %s2936_s22, %s2936_s22 }
0x1311   :  { %p3646_p0 = scmp.ne.s32.totalorder %s2936_s22, %s3645_s25  ;;  %p3651_p2 = scmp.lt.s32.totalorder %s3645_s25, %s3645_s25 }
0x1313   :  { %p3652_p3 = por %p3651_p2, %p3650_p1 }
0x1315   :  { %p3653_p4 = pnand %p3652_p3, %p3646_p0 }
0x134d   :  { %v3490_v12 = vpop.permute.xlu1 %3489 }
0x134e   :  { %v3492_v3 = vunpack.i.h.bf16 %v3490_v12  ;;  %v3491_v44 = vunpack.i.l.bf16 %v3490_v12  ;;  %v3540_v12 = vld [vmem:[%s4468_s4 + $0x70] sm:$0xff]  }
0x1350   :  { %v2616_v48 = vsel %vm387_vm3, %v2297_v2, %v3492_v3  ;;  %v2615_v49 = vsel %vm387_vm3, %v2249_v60, %v3491_v44  ;;  %v3541_v3 = vld [vmem:[%s4468_s4 + $0x78] sm:$0xff]   ;;  %v3050_v44 = vld [vmem:[%s4466_s2 + $0x24] ss:$0 sm:$0xff] }
0x1375   :  { %v3495_v46 = vpop.permute.xlu0 %3494 }
0x1376   :  { %v3497_v42 = vunpack.i.h.bf16 %v3495_v46  ;;  %v3496_v43 = vunpack.i.l.bf16 %v3495_v46  ;;  %v3538_v46 = vld [vmem:[%s4468_s4 + $0x60] sm:$0xff]  }
0x1378   :  { %v2618_v10 = vsel %vm1284_vm5, %v2616_v48, %v3497_v42  ;;  %v2617_v54 = vsel %vm1284_vm5, %v2615_v49, %v3496_v43 }
0x1379   :  { %v2625_v4 = vpop.permute.xlu0 %2624 }
0x137a   :  { %3412 = vmatpush3.bf16.msra.mxu0 %v2625_v4  ;;  %v3539_v4 = vld [vmem:[%s4468_s4 + $0x68] sm:$0xff]  }
0x137b   :  { %3425 = vmatprep.subr.bf16.mxu0 %v3670_v0 }
0x1381   :  { %v3500_v38 = vpop.permute.xlu1 %3499 }
0x1382   :  { %v3502_v52 = vunpack.i.h.bf16 %v3500_v38  ;;  %v3501_v53 = vunpack.i.l.bf16 %v3500_v38 }
0x1384   :  { %v2620_v50 = vsel %vm1287_vm6, %v2618_v10, %v3502_v52  ;;  %v2619_v41 = vsel %vm1287_vm6, %v2617_v54, %v3501_v53 }
0x1385   :  { %v2621_v55 = vpack.c.bf16 %v2620_v50, %v2619_v41 }
0x1387   :  { %3414 = vmatmul.mubr.msk.bf16.vlgmr.msra.gmra.mrb[64].mxu0 %vm181_vm1, %v2621_v55 }
0x1388   :  { %3441 = vmatprep.mubr.msk.bf16.mxu0 %vm3671_vm2, %v3670_v0  ;;  %3426 = vmatpush3.bf16.msra.mxu0 %v3534_v36 }
0x1389   :  { %3427 = vmatprep.subr.bf16.mxu0 %v3670_v0 }
0x138c   :  { %3428 = vmatpush3.bf16.msra.mxu0 %v3535_v37 }
0x138d   :  { %3429 = vmatprep.subr.bf16.mxu0 %v3670_v0 }
0x1390   :  { %3430 = vmatpush3.bf16.msra.mxu0 %v3536_v40 }
0x1391   :  { %3431 = vmatprep.subr.bf16.mxu0 %v3670_v0 }
0x1394   :  { %3432 = vmatpush3.bf16.msra.mxu0 %v3537_v45 }
0x1395   :  { %3433 = vmatprep.subr.bf16.mxu0 %v3670_v0 }
0x1398   :  { %3434 = vmatpush3.bf16.msra.mxu0 %v3538_v46 }
0x1399   :  { %3435 = vmatprep.subr.bf16.mxu0 %v3670_v0 }
0x139c   :  { %3436 = vmatpush3.bf16.msra.mxu0 %v3539_v4 }
0x139d   :  { %3437 = vmatprep.subr.bf16.mxu0 %v3670_v0 }
0x13a0   :  { %3438 = vmatpush3.bf16.msra.mxu0 %v3540_v12 }
0x13a1   :  { %3439 = vmatprep.subr.bf16.mxu0 %v3670_v0 }
0x13a4   :  { %3440 = vmatpush3.bf16.msra.mxu0 %v3541_v3 }
0x145a   :  { %v2665_v59 = vpop.f32.mrb[64].mxu0 }
0x145b   :  { %v2672_v13 = vadd.f32 %v2665_v59, %v4116_v24  ;;  %v3415_v61 = vpop.f32.mrb[65].mxu0 }
0x145c   :  { %v2668_v57 = vpop.f32.mrb[66].mxu0 }
0x145d   :  { %v4375_v27 = vadd.f32 %v3047_v56, %v2672_v13  ;;  %v2673_v26 = vadd.f32 %v2668_v57, %v4119_v25  ;;  %v3416_v29 = vpop.f32.mrb[67].mxu0 }
0x145e   :  { %v3062_v29 = vld [vmem:[%s4466_s2 + $0x22] ss:$0 sm:$0xff] }
0x145f   :  { %v4378_v60 = vadd.f32 %v3047_v56, %v2673_v26  ;;  %v2680_v62 = vsel %vm181_vm1, %v4375_v27, 0.0 }
0x1460   :  { %2681 = vadd.xlane.f32.xlu1 %v2680_v62 }
0x1461   :  { %v2683_v1 = vsel %vm181_vm1, %v4378_v60, 0.0 }
0x1462   :  { %2684 = vadd.xlane.f32.xlu0 %v2683_v1 }
0x14ed   :  { %v2682_v58 = vpop.xlane.xlu1 %2681 }
0x14ee   :  { %v2686_v2 = vmul.f32 0.03125, %v2682_v58 }
0x14ef   :  { %v2685_v6 = vpop.xlane.xlu0 %2684 }
0x14f0   :  { %v2688_v5 = vsub.f32 %v4375_v27, %v2686_v2  ;;  %v2687_v7 = vmul.f32 0.03125, %v2685_v6  ;;  %v2890_v2 = vrot.slane %v4119_v25, 7 }
0x14f2   :  { %v2689_v8 = vsub.f32 %v4378_v60, %v2687_v7  ;;  %v2690_v9 = vmul.f32 %v2688_v5, %v2688_v5 }
0x14f4   :  { %v2692_v11 = vsel %vm181_vm1, %v2690_v9, 0.0  ;;  %v2691_v14 = vmul.f32 %v2689_v8, %v2689_v8 }
0x14f5   :  { %2693 = vadd.xlane.f32.xlu0 %v2692_v11 }
0x14f6   :  { %v2695_v15 = vsel %vm181_vm1, %v2691_v14, 0.0  ;;  %v2899_v14 = vsel %vm2898_vm7, %v4116_v24, %v2890_v2 }
0x14f9   :  { %2696 = vadd.xlane.f32.xlu0 %v2695_v15 }
0x1582   :  { %v2694_v39 = vpop.xlane.xlu0 %2693 }
0x1583   :  { %v2698_v31 = vmul.f32 0.03125, %v2694_v39 }
0x1585   :  { %v2700_v22 = vadd.f32 1e-05, %v2698_v31 }
0x1586   :  { %v2697_v47 = vpop.xlane.xlu0 %2696 }
0x1587   :  { %3630 = vrsqrt.f32 %v2700_v22  ;;  %v2699_v34 = vmul.f32 0.03125, %v2697_v47 }
0x1589   :  { %v2701_v28 = vadd.f32 1e-05, %v2699_v34 }
0x158b   :  { %3632 = vrsqrt.f32 %v2701_v28 }
0x1591   :  { %v3631_v51 = vpop.eup %3630 }
0x1592   :  { %v2704_v30 = vmul.f32 %v3631_v51, %v2688_v5  ;;  %v3063_v51 = vld [vmem:[%s4466_s2 + $0x12] ss:$0 sm:$0xff] }
0x1594   :  { %v2710_v32 = vmul.f32 %v3048_v23, %v2704_v30 }
0x1595   :  { %v3633_v16 = vpop.eup %3632 }
0x1596   :  { %v2705_v33 = vmul.f32 %v3633_v16, %v2689_v8  ;;  %v2716_v63 = vadd.f32 %v3049_v35, %v2710_v32 }
0x1598   :  { %v2711_v20 = vmul.f32 %v3048_v23, %v2705_v33  ;;  %v3064_v23 = vld [vmem:[%s4466_s2 + $0x13] ss:$0 sm:$0xff] }
0x159a   :  { %v2717_v21 = vadd.f32 %v3049_v35, %v2711_v20 }
0x159c   :  { %v2718_v19 = vpack.c.bf16 %v2717_v21, %v2716_v63 }
0x159e   :  { %3422 = vmatmul.mubr.msk.bf16.vlgmr.msra.gmra.mrb[88].mxu1 %vm181_vm1, %v2718_v19 }
0x1671   :  { %v2772_v42 = vpop.f32.mrb[88].mxu1 }
0x1672   :  { %v2773_v43 = vadd.f32 %v3050_v44, %v2772_v42  ;;  %v3423_v38 = vpop.f32.mrb[89].mxu1 }
0x1673   :  { %v2775_v48 = vpop.f32.mrb[90].mxu1 }
0x1674   :  { %v2779_v49 = vmul.f32 -1.702, %v2773_v43  ;;  %v2776_v52 = vadd.f32 %v3050_v44, %v2775_v48  ;;  %v3424_v53 = vpop.f32.mrb[91].mxu1 }
0x1676   :  { %v2781_v10 = vmul.f32 1.442695, %v2779_v49  ;;  %v2780_v54 = vmul.f32 -1.702, %v2776_v52 }
0x1678   :  { %3634 = vpow2.f32 %v2781_v10  ;;  %v2783_v0 = vmul.f32 1.442695, %v2780_v54 }
0x167a   :  { %3636 = vpow2.f32 %v2783_v0 }
0x1682   :  { %v3635_v50 = vpop.eup %3634 }
0x1683   :  { %v2785_v41 = vadd.f32 1.0, %v3635_v50 }
0x1684   :  { %v3637_v55 = vpop.eup %3636 }
0x1685   :  { %3638 = vrcp.f32 %v2785_v41  ;;  %v2786_v56 = vadd.f32 1.0, %v3637_v55 }
0x1687   :  { %3640 = vrcp.f32 %v2786_v56 }
0x168f   :  { %v3639_v59 = vpop.eup %3638 }
0x1690   :  { %v2789_v61 = vmul.f32 %v3639_v59, %v2773_v43 }
0x1691   :  { %v3641_v13 = vpop.eup %3640 }
0x1692   :  { %v2790_v57 = vmul.f32 %v3641_v13, %v2776_v52 }
0x1694   :  { %v2791_v26 = vpack.c.bf16 %v2790_v57, %v2789_v61 }
0x1696   :  { %3442 = vmatmul.mubr.bf16.vlgmr.msra.gmra.mrb[68].mxu0 %v2791_v26 }
0x1769   :  { %v2874_v62 = vpop.f32.mrb[68].mxu0 }
0x176a   :  { %v2881_v1 = vadd.f32 %v2874_v62, %v4375_v27  ;;  %v3443_v58 = vpop.f32.mrb[69].mxu0 }
0x176b   :  { %v2877_v6 = vpop.f32.mrb[70].mxu0 }
0x176c   :  { %v2887_v5 = vadd.f32 %v3062_v29, %v2881_v1  ;;  %v2882_v7 = vadd.f32 %v2877_v6, %v4378_v60  ;;  %v3444_v8 = vpop.f32.mrb[71].mxu0 }
0x176e   :  { %v2893_v9 = vrot.slane %v2887_v5, 6  ;;  %v2888_v11 = vadd.f32 %v3062_v29, %v2882_v7 }
0x1770   :  { %v2896_v15 = vrot.slane %v2888_v11, 5  ;;  %v2901_v17 = vsel %vm2900_vm8, %v2899_v14, %v2893_v9 }
0x1772   :  { %v2903_v18 = vsel %vm2902_vm9, %v2901_v17, %v2896_v15 }
0x1773   :  { %v2905_v27 = vsel %vm2904_vm10, %v2903_v18, 0.0 }
0x1774   :  { %2906 = vadd.xlane.f32.xlu1 %v2905_v27 }
0x1801   :  { %v2907_v25 = vpop.xlane.xlu1 %2906 }
0x1802   :  { %v2908_v39 = vmul.f32 0.03125, %v2907_v25 }
0x1804   :  { %v2909_v31 = vsub.f32 %v2903_v18, %v2908_v39 }
0x1806   :  { %v2910_v22 = vmul.f32 %v2909_v31, %v2909_v31 }
0x1808   :  { %v2911_v60 = vsel %vm2904_vm10, %v2910_v22, 0.0 }
0x1809   :  { %2912 = vadd.xlane.f32.xlu0 %v2911_v60 }
0x1896   :  { %v2913_v47 = vpop.xlane.xlu0 %2912 }
0x1897   :  { %v2914_v34 = vmul.f32 0.03125, %v2913_v47 }
0x1899   :  { %v2915_v28 = vadd.f32 1e-05, %v2914_v34 }
0x189b   :  { %3642 = vrsqrt.f32 %v2915_v28 }
0x18a5   :  { %v3643_v24 = vpop.eup %3642 }
0x18a6   :  { %v2917_v30 = vmul.f32 %v3643_v24, %v2909_v31 }
0x18a8   :  { %v2922_v16 = vmul.f32 %v3063_v51, %v2917_v30 }
0x18aa   :  { %v2927_v32 = vadd.f32 %v3064_v23, %v2922_v16 }
0x18ac   :  { %2928 = vst.msk [vmem:[#allocation2] sm:$0xf] %vm2904_vm10, %v2927_v32 }
0x18ad   :  { %3656 = shalt.err (!%p3653_p4)
}
0x18ae   :  { %s3657_s27 = scalar_lea.hbm %s4469_s5, 64 }
0x18af   :  { %p3658_p5 = scmp.ne.s32.totalorder %s4469_s5, %s3657_s27  ;;  %p3661_p6 = scmp.lt.u32.totalorder %s3657_s27, %s4469_s5 }
0x18b1   :  { %p3663_p7 = pnand %p3661_p6, %p3658_p5 }
0x18b3   :  { %3666 = shalt.err (!%p3663_p7)
}
0x18b4   :  { %2938 = dma.vmem_to_hbm [thread:$0]  %s2936_s22, 64, %s4469_s5, [#allocation3]  }
0x18b5   :  { %3667 = dma.done.wait [#allocation3], 64  }
0x18b6   :  { %3668 = vsyncadd [#allocation3], 4294967232 }
0x18b7   :  { %2942 = vsyncpa [#allocation3], 1 }

</bundles_post_ra>
